<compile_context>
chip_gen: v5e
topology: v5e:2x2
jax: 0.10.0
libtpu: 0.0.40
codegen_flags: <defaults>
</compile_context>

<pallas_src>
import math
import functools

import jax
import jax.numpy as jnp
from jax.experimental import pallas as pl
from jax.experimental.pallas import tpu as pltpu

_LN_EPS = 1e-5
_MATMUL_DTYPE = jnp.bfloat16   # MXU-native; accumulation stays f32


def _encoder_stack_kernel(x_ref,
                          wqkv_ref, bqkv_ref, wo_ref,
                          w1_ref, b1_ref, w2_ref,
                          vecs_ref,
                          o_ref, *, nhead: int, num_layers: int):
    x = x_ref[0].astype(jnp.float32)                 # (S, D), f32 residual path
    S, D = x.shape
    hd = D // nhead

    for l in range(num_layers):                       # static unroll (small L)
        vecs = vecs_ref[l]                            # (6, D) f32
        bo = vecs[0:1, :]
        g1 = vecs[1:2, :]
        be1 = vecs[2:3, :]
        b2 = vecs[3:4, :]
        g2 = vecs[4:5, :]
        be2 = vecs[5:6, :]

        # ---- multi-head self-attention (head-batched, fused per-head QKV) ----
        # 1/sqrt(hd) scale is folded into the packed Q weights/bias (pack time).
        xb = jnp.broadcast_to(x.astype(_MATMUL_DTYPE)[None, :, :], (nhead, S, D))
        qkv = jnp.einsum('hsd,hde->hse', xb, wqkv_ref[l],
                         preferred_element_type=jnp.float32) + bqkv_ref[l]  # (H,S,3hd)
        qh = qkv[:, :, 0 * hd:1 * hd]
        kh = qkv[:, :, 1 * hd:2 * hd]
        vh = qkv[:, :, 2 * hd:3 * hd]

        s = jnp.einsum('hqd,hkd->hqk',
                       qh.astype(_MATMUL_DTYPE), kh.astype(_MATMUL_DTYPE),
                       preferred_element_type=jnp.float32)                   # (H,S,S)
        s = s - jnp.max(s, axis=-1, keepdims=True)
        p = jnp.exp(s)
        p = p * pl.reciprocal(jnp.sum(p, axis=-1, keepdims=True), approx=True)
        ctx = jnp.einsum('hqk,hkd->hqd',
                         p.astype(_MATMUL_DTYPE), vh.astype(_MATMUL_DTYPE),
                         preferred_element_type=jnp.float32)                 # (H,S,hd)

        # per-head output projection, summed over heads -> (S, D); no transposes
        attn = jnp.einsum('hsf,hfd->hsd',
                          ctx.astype(_MATMUL_DTYPE), wo_ref[l],
                          preferred_element_type=jnp.float32)
        attn = jnp.sum(attn, axis=0) + bo

        # ---- residual + LayerNorm 1 (post-norm) ----
        y = x + attn
        mu = jnp.mean(y, axis=-1, keepdims=True)
        var = jnp.mean((y - mu) ** 2, axis=-1, keepdims=True)
        y = (y - mu) * jax.lax.rsqrt(var + _LN_EPS) * g1 + be1

        # ---- feed-forward: Linear -> ReLU -> Linear ----
        h1 = jnp.dot(y.astype(_MATMUL_DTYPE), w1_ref[l],
                     preferred_element_type=jnp.float32) + b1_ref[l]
        h1 = jnp.maximum(h1, 0.0)
        z = jnp.dot(h1.astype(_MATMUL_DTYPE), w2_ref[l],
                    preferred_element_type=jnp.float32) + b2

        # ---- residual + LayerNorm 2 ----
        z = y + z
        mu2 = jnp.mean(z, axis=-1, keepdims=True)
        var2 = jnp.mean((z - mu2) ** 2, axis=-1, keepdims=True)
        x = (z - mu2) * jax.lax.rsqrt(var2 + _LN_EPS) * g2 + be2

    o_ref[0] = x.astype(o_ref.dtype)


def _resident_spec(arr):
    """Whole-array block, constant index_map -> DMA'd once, VMEM-resident across grid."""
    nd = arr.ndim
    return pl.BlockSpec(arr.shape, lambda b, _nd=nd: (0,) * _nd)


def encoder_forward(x, packed, nhead, num_layers):
    """Full encoder stack (all layers) in one pallas_call. x: (B, S, D) f32."""
    B, S, D = x.shape
    wqkv, bqkv, wo = packed["wqkv"], packed["bqkv"], packed["wo"]
    w1, b1, w2, vecs = packed["w1"], packed["b1"], packed["w2"], packed["vecs"]

    in_specs = [
        pl.BlockSpec((1, S, D), lambda b: (b, 0, 0)),   # x: one batch element / step
        _resident_spec(wqkv),                           # (L, H, D, 3hd) bf16
        _resident_spec(bqkv),                           # (L, H, 1, 3hd) f32
        _resident_spec(wo),                             # (L, H, hd, D)  bf16
        _resident_spec(w1),                             # (L, D, F)      bf16
        _resident_spec(b1),                             # (L, 1, F)      f32
        _resident_spec(w2),                             # (L, F, D)      bf16
        _resident_spec(vecs),                           # (L, 6, D)      f32
    ]

    fn = pl.pallas_call(
        functools.partial(_encoder_stack_kernel, nhead=nhead, num_layers=num_layers),
        out_shape=jax.ShapeDtypeStruct((B, S, D), jnp.float32),
        grid=(B,),
        in_specs=in_specs,
        out_specs=pl.BlockSpec((1, S, D), lambda b: (b, 0, 0)),
        compiler_params=pltpu.CompilerParams(
            dimension_semantics=("parallel",)),          # lets v7x use both TCs
    )
    return fn(x, wqkv, bqkv, wo, w1, b1, w2, vecs)


# ---------------------------------------------------------------------------
# Parameter construction / packing
# ---------------------------------------------------------------------------
def init_layer_params(key, d_model, dim_feedforward):
    """Deterministic synthetic parameters; weights stored as (in, out)."""
    ks = jax.random.split(key, 8)
    s = 0.05
    return dict(
        wq=s * jax.random.normal(ks[0], (d_model, d_model), jnp.float32),
        wk=s * jax.random.normal(ks[1], (d_model, d_model), jnp.float32),
        wv=s * jax.random.normal(ks[2], (d_model, d_model), jnp.float32),
        bq=jnp.zeros((d_model,), jnp.float32),
        bk=jnp.zeros((d_model,), jnp.float32),
        bv=jnp.zeros((d_model,), jnp.float32),
        wo=s * jax.random.normal(ks[3], (d_model, d_model), jnp.float32),
        bo=0.01 * jax.random.normal(ks[4], (d_model,), jnp.float32),
        g1=jnp.ones((d_model,), jnp.float32),
        be1=jnp.zeros((d_model,), jnp.float32),
        w1=s * jax.random.normal(ks[5], (d_model, dim_feedforward), jnp.float32),
        b1=0.01 * jax.random.normal(ks[6], (dim_feedforward,), jnp.float32),
        w2=s * jax.random.normal(ks[7], (dim_feedforward, d_model), jnp.float32),
        b2=jnp.zeros((d_model,), jnp.float32),
        g2=jnp.ones((d_model,), jnp.float32),
        be2=jnp.zeros((d_model,), jnp.float32),
    )


def pack_params(layers, d_model, nhead):
    """Stack per-layer params on a leading layer axis, head-major attention weights.

    The 1/sqrt(head_dim) attention scale is folded into the Q projection here
    (pack time, free at runtime).
    """
    hd = d_model // nhead
    scale = 1.0 / math.sqrt(hd)

    def head_cols(w):                       # (D, D) -> (H, D, hd)
        return jnp.stack([w[:, h * hd:(h + 1) * hd] for h in range(nhead)], axis=0)

    wqkv = jnp.stack([
        jnp.concatenate([head_cols(p["wq"] * scale),     # scale folded into Q
                         head_cols(p["wk"]),
                         head_cols(p["wv"])], axis=-1)
        for p in layers], axis=0)                                   # (L, H, D, 3hd)
    bqkv = jnp.stack([
        jnp.concatenate([(p["bq"] * scale).reshape(nhead, hd),      # scale folded into Q bias
                         p["bk"].reshape(nhead, hd),
                         p["bv"].reshape(nhead, hd)], axis=-1)[:, None, :]
        for p in layers], axis=0)                                   # (L, H, 1, 3hd)
    wo = jnp.stack([p["wo"].reshape(nhead, hd, d_model) for p in layers], axis=0)
    w1 = jnp.stack([p["w1"] for p in layers], axis=0)               # (L, D, F)
    b1 = jnp.stack([p["b1"][None, :] for p in layers], axis=0)      # (L, 1, F)
    w2 = jnp.stack([p["w2"] for p in layers], axis=0)               # (L, F, D)
    vecs = jnp.stack([jnp.stack([p["bo"], p["g1"], p["be1"],
                                 p["b2"], p["g2"], p["be2"]], axis=0)
                      for p in layers], axis=0)                     # (L, 6, D)
    return dict(
        wqkv=wqkv.astype(_MATMUL_DTYPE),
        bqkv=bqkv.astype(jnp.float32),
        wo=wo.astype(_MATMUL_DTYPE),
        w1=w1.astype(_MATMUL_DTYPE),
        b1=b1.astype(jnp.float32),
        w2=w2.astype(_MATMUL_DTYPE),
        vecs=vecs.astype(jnp.float32),
    )


class MultiResolutionEncoderPallas:
    def __init__(self, d_model, nhead, dim_feedforward, num_layers, key):
        assert d_model % nhead == 0
        self.nhead = nhead
        self.num_layers = num_layers
        keys = jax.random.split(key, num_layers)
        self.layers_f32 = [init_layer_params(k, d_model, dim_feedforward) for k in keys]
        self.packed = pack_params(self.layers_f32, d_model, nhead)

    def __call__(self, x):
        assert x.ndim == 3, f"Expected 3D input tensor but got {x.ndim}D tensor"
        return encoder_forward(x, self.packed, self.nhead, self.num_layers)


# ---------------------------------------------------------------------------
# Pure-JAX f32 reference (for correctness check only)
# ---------------------------------------------------------------------------
def _reference_forward(x, layers, nhead):
    B, S, D = x.shape
    hd = D // nhead
    for p in layers:
        q = x @ p["wq"] + p["bq"]
        k = x @ p["wk"] + p["bk"]
        v = x @ p["wv"] + p["bv"]
        q = q.reshape(B, S, nhead, hd).transpose(0, 2, 1, 3)
        k = k.reshape(B, S, nhead, hd).transpose(0, 2, 1, 3)
        v = v.reshape(B, S, nhead, hd).transpose(0, 2, 1, 3)
        s = jnp.einsum('bhqd,bhkd->bhqk', q, k) / math.sqrt(hd)
        a = jax.nn.softmax(s, axis=-1)
        ctx = jnp.einsum('bhqk,bhkd->bhqd', a, v)
        ctx = ctx.transpose(0, 2, 1, 3).reshape(B, S, D)
        attn = ctx @ p["wo"] + p["bo"]
        y = x + attn
        y = (y - y.mean(-1, keepdims=True)) / jnp.sqrt(
            y.var(-1, keepdims=True) + _LN_EPS) * p["g1"] + p["be1"]
        h = jnp.maximum(y @ p["w1"] + p["b1"], 0.0)
        z = y + (h @ p["w2"] + p["b2"])
        x = (z - z.mean(-1, keepdims=True)) / jnp.sqrt(
            z.var(-1, keepdims=True) + _LN_EPS) * p["g2"] + p["be2"]
    return x


if __name__ == "__main__":
    # small shapes consistent with the module: (batch, seq, d_model)
    B, S, D = 2, 8, 32
    nhead, dim_ff, num_layers = 4, 64, 2

    key = jax.random.PRNGKey(0)
    k_x, k_p = jax.random.split(key)
    x = jax.random.normal(k_x, (B, S, D), jnp.float32)

    model = MultiResolutionEncoderPallas(D, nhead, dim_ff, num_layers, k_p)
    out = model(x)
    out = jax.block_until_ready(out)

    assert out.shape == (B, S, D) and out.dtype == jnp.float32
    assert bool(jnp.all(jnp.isfinite(out)))

    # loose tolerance: kernel uses bf16 matmul operands with f32 accumulation
    ref = _reference_forward(x, model.layers_f32, nhead)
    max_err = float(jnp.max(jnp.abs(out - ref)))
    assert max_err < 1e-1, f"mismatch vs f32 reference: max_err={max_err}"

    print("KERNEL_OK")
</pallas_src>

<mosaic_0001>
module attributes {stable_mosaic.version = 11 : i64} {
  func.func @_encoder_stack_kernel(%arg0: i32, %arg1: memref<1x8x32xf32, #tpu.memory_space<vmem>>, %arg2: memref<2x4x32x24xbf16, #tpu.memory_space<vmem>>, %arg3: memref<2x4x1x24xf32, #tpu.memory_space<vmem>>, %arg4: memref<2x4x8x32xbf16, #tpu.memory_space<vmem>>, %arg5: memref<2x32x64xbf16, #tpu.memory_space<vmem>>, %arg6: memref<2x1x64xf32, #tpu.memory_space<vmem>>, %arg7: memref<2x64x32xbf16, #tpu.memory_space<vmem>>, %arg8: memref<2x6x32xf32, #tpu.memory_space<vmem>>, %arg9: memref<1x8x32xf32, #tpu.memory_space<vmem>>) attributes {dimension_semantics = [#tpu.dimension_semantics<parallel>], iteration_bounds = array<i64: 2>, scalar_prefetch = 0 : i64, scratch_operands = 0 : i64, tpu.core_type = #tpu.core_type<tc>, window_params = [{transform_indices = @transform_0, window_bounds = array<i64: 1, 8, 32>}, {pipeline_mode = #tpu.pipeline_mode<synchronous>, transform_indices = @transform_1, window_bounds = array<i64: 2, 4, 32, 24>}, {pipeline_mode = #tpu.pipeline_mode<synchronous>, transform_indices = @transform_2, window_bounds = array<i64: 2, 4, 1, 24>}, {pipeline_mode = #tpu.pipeline_mode<synchronous>, transform_indices = @transform_3, window_bounds = array<i64: 2, 4, 8, 32>}, {pipeline_mode = #tpu.pipeline_mode<synchronous>, transform_indices = @transform_4, window_bounds = array<i64: 2, 32, 64>}, {pipeline_mode = #tpu.pipeline_mode<synchronous>, transform_indices = @transform_5, window_bounds = array<i64: 2, 1, 64>}, {pipeline_mode = #tpu.pipeline_mode<synchronous>, transform_indices = @transform_6, window_bounds = array<i64: 2, 64, 32>}, {pipeline_mode = #tpu.pipeline_mode<synchronous>, transform_indices = @transform_7, window_bounds = array<i64: 2, 6, 32>}, {transform_indices = @transform_8, window_bounds = array<i64: 1, 8, 32>}]} {
    %c0 = arith.constant 0 : index
    %c0_0 = arith.constant 0 : index
    %c0_1 = arith.constant 0 : index
    %0 = vector.load %arg1[%c0, %c0_0, %c0_1] : memref<1x8x32xf32, #tpu.memory_space<vmem>>, vector<1x8x32xf32>
    %1 = vector.shape_cast %0 : vector<1x8x32xf32> to vector<8x32xf32>
    %c0_2 = arith.constant 0 : index
    %c0_3 = arith.constant 0 : index
    %c0_4 = arith.constant 0 : index
    %2 = vector.load %arg8[%c0_2, %c0_3, %c0_4] : memref<2x6x32xf32, #tpu.memory_space<vmem>>, vector<1x6x32xf32>
    %3 = vector.shape_cast %2 : vector<1x6x32xf32> to vector<6x32xf32>
    %4 = vector.extract_strided_slice %3 {offsets = [0, 0], sizes = [1, 32], strides = [1, 1]} : vector<6x32xf32> to vector<1x32xf32>
    %5 = vector.extract_strided_slice %3 {offsets = [1, 0], sizes = [1, 32], strides = [1, 1]} : vector<6x32xf32> to vector<1x32xf32>
    %6 = vector.extract_strided_slice %3 {offsets = [2, 0], sizes = [1, 32], strides = [1, 1]} : vector<6x32xf32> to vector<1x32xf32>
    %7 = vector.extract_strided_slice %3 {offsets = [3, 0], sizes = [1, 32], strides = [1, 1]} : vector<6x32xf32> to vector<1x32xf32>
    %8 = vector.extract_strided_slice %3 {offsets = [4, 0], sizes = [1, 32], strides = [1, 1]} : vector<6x32xf32> to vector<1x32xf32>
    %9 = vector.extract_strided_slice %3 {offsets = [5, 0], sizes = [1, 32], strides = [1, 1]} : vector<6x32xf32> to vector<1x32xf32>
    %10 = arith.truncf %1 : vector<8x32xf32> to vector<8x32xbf16>
    %11 = vector.shape_cast %10 : vector<8x32xbf16> to vector<1x8x32xbf16>
    %12 = vector.shape_cast %11 : vector<1x8x32xbf16> to vector<1x8x32xbf16>
    %13 = vector.broadcast %12 : vector<1x8x32xbf16> to vector<4x8x32xbf16>
    %c0_5 = arith.constant 0 : index
    %c0_6 = arith.constant 0 : index
    %c0_7 = arith.constant 0 : index
    %c0_8 = arith.constant 0 : index
    %14 = vector.load %arg2[%c0_5, %c0_6, %c0_7, %c0_8] : memref<2x4x32x24xbf16, #tpu.memory_space<vmem>>, vector<1x4x32x24xbf16>
    %15 = vector.shape_cast %14 : vector<1x4x32x24xbf16> to vector<4x32x24xbf16>
    "tpu.trace_start"() <{level = 10 : i32, message = "hsd,hde->hse"}> : () -> ()
    %cst = arith.constant dense<0.000000e+00> : vector<4x8x24xf32>
    %16 = tpu.matmul %13, %15, %cst {dimension_numbers = #tpu.dot_dimension_numbers<[2], [1], [1], [2], [0, 0, 0, 1, 1, 2], [0], [0]>} : vector<4x8x32xbf16>, vector<4x32x24xbf16>, vector<4x8x24xf32> -> vector<4x8x24xf32>
    "tpu.trace_stop"() : () -> ()
    %c0_9 = arith.constant 0 : index
    %c0_10 = arith.constant 0 : index
    %c0_11 = arith.constant 0 : index
    %c0_12 = arith.constant 0 : index
    %17 = vector.load %arg3[%c0_9, %c0_10, %c0_11, %c0_12] : memref<2x4x1x24xf32, #tpu.memory_space<vmem>>, vector<1x4x1x24xf32>
    %18 = vector.shape_cast %17 : vector<1x4x1x24xf32> to vector<4x1x24xf32>
    %19 = vector.broadcast %18 : vector<4x1x24xf32> to vector<4x8x24xf32>
    %20 = arith.addf %16, %19 : vector<4x8x24xf32>
    %21 = vector.extract_strided_slice %20 {offsets = [0, 0, 0], sizes = [4, 8, 8], strides = [1, 1, 1]} : vector<4x8x24xf32> to vector<4x8x8xf32>
    %22 = vector.extract_strided_slice %20 {offsets = [0, 0, 8], sizes = [4, 8, 8], strides = [1, 1, 1]} : vector<4x8x24xf32> to vector<4x8x8xf32>
    %23 = vector.extract_strided_slice %20 {offsets = [0, 0, 16], sizes = [4, 8, 8], strides = [1, 1, 1]} : vector<4x8x24xf32> to vector<4x8x8xf32>
    %24 = arith.truncf %21 : vector<4x8x8xf32> to vector<4x8x8xbf16>
    %25 = arith.truncf %22 : vector<4x8x8xf32> to vector<4x8x8xbf16>
    "tpu.trace_start"() <{level = 10 : i32, message = "hqd,hkd->hqk"}> : () -> ()
    %cst_13 = arith.constant dense<0.000000e+00> : vector<4x8x8xf32>
    %26 = tpu.matmul %24, %25, %cst_13 {dimension_numbers = #tpu.dot_dimension_numbers<[2], [2], [1], [1], [0, 0, 0, 1, 1, 1], [0], [0]>} : vector<4x8x8xbf16>, vector<4x8x8xbf16>, vector<4x8x8xf32> -> vector<4x8x8xf32>
    "tpu.trace_stop"() : () -> ()
    %cst_14 = arith.constant dense<0xFF800000> : vector<4x8xf32>
    %27 = vector.multi_reduction <maximumf>, %26, %cst_14 [2] : vector<4x8x8xf32> to vector<4x8xf32>
    %28 = vector.shape_cast %27 : vector<4x8xf32> to vector<4x8x1xf32>
    %29 = vector.broadcast %28 : vector<4x8x1xf32> to vector<4x8x8xf32>
    %30 = arith.subf %26, %29 : vector<4x8x8xf32>
    %31 = math.exp %30 : vector<4x8x8xf32>
    %cst_15 = arith.constant dense<0.000000e+00> : vector<4x8xf32>
    %32 = vector.multi_reduction <add>, %31, %cst_15 [2] : vector<4x8x8xf32> to vector<4x8xf32>
    %33 = vector.shape_cast %32 : vector<4x8xf32> to vector<4x8x1xf32>
    %34 = tpu.reciprocal %33 {approx = true} : vector<4x8x1xf32> -> vector<4x8x1xf32>
    %35 = vector.broadcast %34 : vector<4x8x1xf32> to vector<4x8x8xf32>
    %36 = arith.mulf %31, %35 : vector<4x8x8xf32>
    %37 = arith.truncf %36 : vector<4x8x8xf32> to vector<4x8x8xbf16>
    %38 = arith.truncf %23 : vector<4x8x8xf32> to vector<4x8x8xbf16>
    "tpu.trace_start"() <{level = 10 : i32, message = "hqk,hkd->hqd"}> : () -> ()
    %cst_16 = arith.constant dense<0.000000e+00> : vector<4x8x8xf32>
    %39 = tpu.matmul %37, %38, %cst_16 {dimension_numbers = #tpu.dot_dimension_numbers<[2], [1], [1], [2], [0, 0, 0, 1, 1, 2], [0], [0]>} : vector<4x8x8xbf16>, vector<4x8x8xbf16>, vector<4x8x8xf32> -> vector<4x8x8xf32>
    "tpu.trace_stop"() : () -> ()
    %40 = arith.truncf %39 : vector<4x8x8xf32> to vector<4x8x8xbf16>
    %c0_17 = arith.constant 0 : index
    %c0_18 = arith.constant 0 : index
    %c0_19 = arith.constant 0 : index
    %c0_20 = arith.constant 0 : index
    %41 = vector.load %arg4[%c0_17, %c0_18, %c0_19, %c0_20] : memref<2x4x8x32xbf16, #tpu.memory_space<vmem>>, vector<1x4x8x32xbf16>
    %42 = vector.shape_cast %41 : vector<1x4x8x32xbf16> to vector<4x8x32xbf16>
    "tpu.trace_start"() <{level = 10 : i32, message = "hsf,hfd->hsd"}> : () -> ()
    %cst_21 = arith.constant dense<0.000000e+00> : vector<4x8x32xf32>
    %43 = tpu.matmul %40, %42, %cst_21 {dimension_numbers = #tpu.dot_dimension_numbers<[2], [1], [1], [2], [0, 0, 0, 1, 1, 2], [0], [0]>} : vector<4x8x8xbf16>, vector<4x8x32xbf16>, vector<4x8x32xf32> -> vector<4x8x32xf32>
    "tpu.trace_stop"() : () -> ()
    %cst_22 = arith.constant dense<0.000000e+00> : vector<8x32xf32>
    %44 = vector.multi_reduction <add>, %43, %cst_22 [0] : vector<4x8x32xf32> to vector<8x32xf32>
    %45 = vector.broadcast %4 : vector<1x32xf32> to vector<8x32xf32>
    %46 = arith.addf %44, %45 : vector<8x32xf32>
    %47 = arith.addf %1, %46 : vector<8x32xf32>
    %cst_23 = arith.constant dense<0.000000e+00> : vector<8xf32>
    %48 = vector.multi_reduction <add>, %47, %cst_23 [1] : vector<8x32xf32> to vector<8xf32>
    %49 = vector.shape_cast %48 : vector<8xf32> to vector<8x1xf32>
    %cst_24 = arith.constant 3.200000e+01 : f32
    %50 = vector.broadcast %cst_24 : f32 to vector<8x1xf32>
    %51 = arith.divf %49, %50 : vector<8x1xf32>
    %52 = vector.broadcast %51 : vector<8x1xf32> to vector<8x32xf32>
    %53 = arith.subf %47, %52 : vector<8x32xf32>
    %54 = arith.mulf %53, %53 : vector<8x32xf32>
    %cst_25 = arith.constant dense<0.000000e+00> : vector<8xf32>
    %55 = vector.multi_reduction <add>, %54, %cst_25 [1] : vector<8x32xf32> to vector<8xf32>
    %56 = vector.shape_cast %55 : vector<8xf32> to vector<8x1xf32>
    %cst_26 = arith.constant 3.200000e+01 : f32
    %57 = vector.broadcast %cst_26 : f32 to vector<8x1xf32>
    %58 = arith.divf %56, %57 : vector<8x1xf32>
    %59 = vector.broadcast %51 : vector<8x1xf32> to vector<8x32xf32>
    %60 = arith.subf %47, %59 : vector<8x32xf32>
    %cst_27 = arith.constant 9.99999974E-6 : f32
    %61 = vector.broadcast %cst_27 : f32 to vector<8x1xf32>
    %62 = arith.addf %58, %61 : vector<8x1xf32>
    %63 = math.rsqrt %62 : vector<8x1xf32>
    %64 = vector.broadcast %63 : vector<8x1xf32> to vector<8x32xf32>
    %65 = arith.mulf %60, %64 : vector<8x32xf32>
    %66 = vector.broadcast %5 : vector<1x32xf32> to vector<8x32xf32>
    %67 = arith.mulf %65, %66 : vector<8x32xf32>
    %68 = vector.broadcast %6 : vector<1x32xf32> to vector<8x32xf32>
    %69 = arith.addf %67, %68 : vector<8x32xf32>
    %70 = arith.truncf %69 : vector<8x32xf32> to vector<8x32xbf16>
    %c0_28 = arith.constant 0 : index
    %c0_29 = arith.constant 0 : index
    %c0_30 = arith.constant 0 : index
    %71 = vector.load %arg5[%c0_28, %c0_29, %c0_30] : memref<2x32x64xbf16, #tpu.memory_space<vmem>>, vector<1x32x64xbf16>
    %72 = vector.shape_cast %71 : vector<1x32x64xbf16> to vector<32x64xbf16>
    %cst_31 = arith.constant dense<0.000000e+00> : vector<8x64xf32>
    %73 = tpu.matmul %70, %72, %cst_31 {dimension_numbers = #tpu.dot_dimension_numbers<[1], [0], [0], [1], [0, 0, 1, 1], [], []>} : vector<8x32xbf16>, vector<32x64xbf16>, vector<8x64xf32> -> vector<8x64xf32>
    %c0_32 = arith.constant 0 : index
    %c0_33 = arith.constant 0 : index
    %c0_34 = arith.constant 0 : index
    %74 = vector.load %arg6[%c0_32, %c0_33, %c0_34] : memref<2x1x64xf32, #tpu.memory_space<vmem>>, vector<1x1x64xf32>
    %75 = vector.shape_cast %74 : vector<1x1x64xf32> to vector<1x64xf32>
    %76 = vector.broadcast %75 : vector<1x64xf32> to vector<8x64xf32>
    %77 = arith.addf %73, %76 : vector<8x64xf32>
    %cst_35 = arith.constant 0.000000e+00 : f32
    %78 = vector.broadcast %cst_35 : f32 to vector<8x64xf32>
    %79 = arith.maximumf %77, %78 : vector<8x64xf32>
    %80 = arith.truncf %79 : vector<8x64xf32> to vector<8x64xbf16>
    %c0_36 = arith.constant 0 : index
    %c0_37 = arith.constant 0 : index
    %c0_38 = arith.constant 0 : index
    %81 = vector.load %arg7[%c0_36, %c0_37, %c0_38] : memref<2x64x32xbf16, #tpu.memory_space<vmem>>, vector<1x64x32xbf16>
    %82 = vector.shape_cast %81 : vector<1x64x32xbf16> to vector<64x32xbf16>
    %cst_39 = arith.constant dense<0.000000e+00> : vector<8x32xf32>
    %83 = tpu.matmul %80, %82, %cst_39 {dimension_numbers = #tpu.dot_dimension_numbers<[1], [0], [0], [1], [0, 0, 1, 1], [], []>} : vector<8x64xbf16>, vector<64x32xbf16>, vector<8x32xf32> -> vector<8x32xf32>
    %84 = vector.broadcast %7 : vector<1x32xf32> to vector<8x32xf32>
    %85 = arith.addf %83, %84 : vector<8x32xf32>
    %86 = arith.addf %69, %85 : vector<8x32xf32>
    %cst_40 = arith.constant dense<0.000000e+00> : vector<8xf32>
    %87 = vector.multi_reduction <add>, %86, %cst_40 [1] : vector<8x32xf32> to vector<8xf32>
    %88 = vector.shape_cast %87 : vector<8xf32> to vector<8x1xf32>
    %cst_41 = arith.constant 3.200000e+01 : f32
    %89 = vector.broadcast %cst_41 : f32 to vector<8x1xf32>
    %90 = arith.divf %88, %89 : vector<8x1xf32>
    %91 = vector.broadcast %90 : vector<8x1xf32> to vector<8x32xf32>
    %92 = arith.subf %86, %91 : vector<8x32xf32>
    %93 = arith.mulf %92, %92 : vector<8x32xf32>
    %cst_42 = arith.constant dense<0.000000e+00> : vector<8xf32>
    %94 = vector.multi_reduction <add>, %93, %cst_42 [1] : vector<8x32xf32> to vector<8xf32>
    %95 = vector.shape_cast %94 : vector<8xf32> to vector<8x1xf32>
    %cst_43 = arith.constant 3.200000e+01 : f32
    %96 = vector.broadcast %cst_43 : f32 to vector<8x1xf32>
    %97 = arith.divf %95, %96 : vector<8x1xf32>
    %98 = vector.broadcast %90 : vector<8x1xf32> to vector<8x32xf32>
    %99 = arith.subf %86, %98 : vector<8x32xf32>
    %cst_44 = arith.constant 9.99999974E-6 : f32
    %100 = vector.broadcast %cst_44 : f32 to vector<8x1xf32>
    %101 = arith.addf %97, %100 : vector<8x1xf32>
    %102 = math.rsqrt %101 : vector<8x1xf32>
    %103 = vector.broadcast %102 : vector<8x1xf32> to vector<8x32xf32>
    %104 = arith.mulf %99, %103 : vector<8x32xf32>
    %105 = vector.broadcast %8 : vector<1x32xf32> to vector<8x32xf32>
    %106 = arith.mulf %104, %105 : vector<8x32xf32>
    %107 = vector.broadcast %9 : vector<1x32xf32> to vector<8x32xf32>
    %108 = arith.addf %106, %107 : vector<8x32xf32>
    %c1 = arith.constant 1 : index
    %c0_45 = arith.constant 0 : index
    %c0_46 = arith.constant 0 : index
    %109 = vector.load %arg8[%c1, %c0_45, %c0_46] : memref<2x6x32xf32, #tpu.memory_space<vmem>>, vector<1x6x32xf32>
    %110 = vector.shape_cast %109 : vector<1x6x32xf32> to vector<6x32xf32>
    %111 = vector.extract_strided_slice %110 {offsets = [0, 0], sizes = [1, 32], strides = [1, 1]} : vector<6x32xf32> to vector<1x32xf32>
    %112 = vector.extract_strided_slice %110 {offsets = [1, 0], sizes = [1, 32], strides = [1, 1]} : vector<6x32xf32> to vector<1x32xf32>
    %113 = vector.extract_strided_slice %110 {offsets = [2, 0], sizes = [1, 32], strides = [1, 1]} : vector<6x32xf32> to vector<1x32xf32>
    %114 = vector.extract_strided_slice %110 {offsets = [3, 0], sizes = [1, 32], strides = [1, 1]} : vector<6x32xf32> to vector<1x32xf32>
    %115 = vector.extract_strided_slice %110 {offsets = [4, 0], sizes = [1, 32], strides = [1, 1]} : vector<6x32xf32> to vector<1x32xf32>
    %116 = vector.extract_strided_slice %110 {offsets = [5, 0], sizes = [1, 32], strides = [1, 1]} : vector<6x32xf32> to vector<1x32xf32>
    %117 = arith.truncf %108 : vector<8x32xf32> to vector<8x32xbf16>
    %118 = vector.shape_cast %117 : vector<8x32xbf16> to vector<1x8x32xbf16>
    %119 = vector.shape_cast %118 : vector<1x8x32xbf16> to vector<1x8x32xbf16>
    %120 = vector.broadcast %119 : vector<1x8x32xbf16> to vector<4x8x32xbf16>
    %c1_47 = arith.constant 1 : index
    %c0_48 = arith.constant 0 : index
    %c0_49 = arith.constant 0 : index
    %c0_50 = arith.constant 0 : index
    %121 = vector.load %arg2[%c1_47, %c0_48, %c0_49, %c0_50] : memref<2x4x32x24xbf16, #tpu.memory_space<vmem>>, vector<1x4x32x24xbf16>
    %122 = vector.shape_cast %121 : vector<1x4x32x24xbf16> to vector<4x32x24xbf16>
    "tpu.trace_start"() <{level = 10 : i32, message = "hsd,hde->hse"}> : () -> ()
    %cst_51 = arith.constant dense<0.000000e+00> : vector<4x8x24xf32>
    %123 = tpu.matmul %120, %122, %cst_51 {dimension_numbers = #tpu.dot_dimension_numbers<[2], [1], [1], [2], [0, 0, 0, 1, 1, 2], [0], [0]>} : vector<4x8x32xbf16>, vector<4x32x24xbf16>, vector<4x8x24xf32> -> vector<4x8x24xf32>
    "tpu.trace_stop"() : () -> ()
    %c1_52 = arith.constant 1 : index
    %c0_53 = arith.constant 0 : index
    %c0_54 = arith.constant 0 : index
    %c0_55 = arith.constant 0 : index
    %124 = vector.load %arg3[%c1_52, %c0_53, %c0_54, %c0_55] : memref<2x4x1x24xf32, #tpu.memory_space<vmem>>, vector<1x4x1x24xf32>
    %125 = vector.shape_cast %124 : vector<1x4x1x24xf32> to vector<4x1x24xf32>
    %126 = vector.broadcast %125 : vector<4x1x24xf32> to vector<4x8x24xf32>
    %127 = arith.addf %123, %126 : vector<4x8x24xf32>
    %128 = vector.extract_strided_slice %127 {offsets = [0, 0, 0], sizes = [4, 8, 8], strides = [1, 1, 1]} : vector<4x8x24xf32> to vector<4x8x8xf32>
    %129 = vector.extract_strided_slice %127 {offsets = [0, 0, 8], sizes = [4, 8, 8], strides = [1, 1, 1]} : vector<4x8x24xf32> to vector<4x8x8xf32>
    %130 = vector.extract_strided_slice %127 {offsets = [0, 0, 16], sizes = [4, 8, 8], strides = [1, 1, 1]} : vector<4x8x24xf32> to vector<4x8x8xf32>
    %131 = arith.truncf %128 : vector<4x8x8xf32> to vector<4x8x8xbf16>
    %132 = arith.truncf %129 : vector<4x8x8xf32> to vector<4x8x8xbf16>
    "tpu.trace_start"() <{level = 10 : i32, message = "hqd,hkd->hqk"}> : () -> ()
    %cst_56 = arith.constant dense<0.000000e+00> : vector<4x8x8xf32>
    %133 = tpu.matmul %131, %132, %cst_56 {dimension_numbers = #tpu.dot_dimension_numbers<[2], [2], [1], [1], [0, 0, 0, 1, 1, 1], [0], [0]>} : vector<4x8x8xbf16>, vector<4x8x8xbf16>, vector<4x8x8xf32> -> vector<4x8x8xf32>
    "tpu.trace_stop"() : () -> ()
    %cst_57 = arith.constant dense<0xFF800000> : vector<4x8xf32>
    %134 = vector.multi_reduction <maximumf>, %133, %cst_57 [2] : vector<4x8x8xf32> to vector<4x8xf32>
    %135 = vector.shape_cast %134 : vector<4x8xf32> to vector<4x8x1xf32>
    %136 = vector.broadcast %135 : vector<4x8x1xf32> to vector<4x8x8xf32>
    %137 = arith.subf %133, %136 : vector<4x8x8xf32>
    %138 = math.exp %137 : vector<4x8x8xf32>
    %cst_58 = arith.constant dense<0.000000e+00> : vector<4x8xf32>
    %139 = vector.multi_reduction <add>, %138, %cst_58 [2] : vector<4x8x8xf32> to vector<4x8xf32>
    %140 = vector.shape_cast %139 : vector<4x8xf32> to vector<4x8x1xf32>
    %141 = tpu.reciprocal %140 {approx = true} : vector<4x8x1xf32> -> vector<4x8x1xf32>
    %142 = vector.broadcast %141 : vector<4x8x1xf32> to vector<4x8x8xf32>
    %143 = arith.mulf %138, %142 : vector<4x8x8xf32>
    %144 = arith.truncf %143 : vector<4x8x8xf32> to vector<4x8x8xbf16>
    %145 = arith.truncf %130 : vector<4x8x8xf32> to vector<4x8x8xbf16>
    "tpu.trace_start"() <{level = 10 : i32, message = "hqk,hkd->hqd"}> : () -> ()
    %cst_59 = arith.constant dense<0.000000e+00> : vector<4x8x8xf32>
    %146 = tpu.matmul %144, %145, %cst_59 {dimension_numbers = #tpu.dot_dimension_numbers<[2], [1], [1], [2], [0, 0, 0, 1, 1, 2], [0], [0]>} : vector<4x8x8xbf16>, vector<4x8x8xbf16>, vector<4x8x8xf32> -> vector<4x8x8xf32>
    "tpu.trace_stop"() : () -> ()
    %147 = arith.truncf %146 : vector<4x8x8xf32> to vector<4x8x8xbf16>
    %c1_60 = arith.constant 1 : index
    %c0_61 = arith.constant 0 : index
    %c0_62 = arith.constant 0 : index
    %c0_63 = arith.constant 0 : index
    %148 = vector.load %arg4[%c1_60, %c0_61, %c0_62, %c0_63] : memref<2x4x8x32xbf16, #tpu.memory_space<vmem>>, vector<1x4x8x32xbf16>
    %149 = vector.shape_cast %148 : vector<1x4x8x32xbf16> to vector<4x8x32xbf16>
    "tpu.trace_start"() <{level = 10 : i32, message = "hsf,hfd->hsd"}> : () -> ()
    %cst_64 = arith.constant dense<0.000000e+00> : vector<4x8x32xf32>
    %150 = tpu.matmul %147, %149, %cst_64 {dimension_numbers = #tpu.dot_dimension_numbers<[2], [1], [1], [2], [0, 0, 0, 1, 1, 2], [0], [0]>} : vector<4x8x8xbf16>, vector<4x8x32xbf16>, vector<4x8x32xf32> -> vector<4x8x32xf32>
    "tpu.trace_stop"() : () -> ()
    %cst_65 = arith.constant dense<0.000000e+00> : vector<8x32xf32>
    %151 = vector.multi_reduction <add>, %150, %cst_65 [0] : vector<4x8x32xf32> to vector<8x32xf32>
    %152 = vector.broadcast %111 : vector<1x32xf32> to vector<8x32xf32>
    %153 = arith.addf %151, %152 : vector<8x32xf32>
    %154 = arith.addf %108, %153 : vector<8x32xf32>
    %cst_66 = arith.constant dense<0.000000e+00> : vector<8xf32>
    %155 = vector.multi_reduction <add>, %154, %cst_66 [1] : vector<8x32xf32> to vector<8xf32>
    %156 = vector.shape_cast %155 : vector<8xf32> to vector<8x1xf32>
    %cst_67 = arith.constant 3.200000e+01 : f32
    %157 = vector.broadcast %cst_67 : f32 to vector<8x1xf32>
    %158 = arith.divf %156, %157 : vector<8x1xf32>
    %159 = vector.broadcast %158 : vector<8x1xf32> to vector<8x32xf32>
    %160 = arith.subf %154, %159 : vector<8x32xf32>
    %161 = arith.mulf %160, %160 : vector<8x32xf32>
    %cst_68 = arith.constant dense<0.000000e+00> : vector<8xf32>
    %162 = vector.multi_reduction <add>, %161, %cst_68 [1] : vector<8x32xf32> to vector<8xf32>
    %163 = vector.shape_cast %162 : vector<8xf32> to vector<8x1xf32>
    %cst_69 = arith.constant 3.200000e+01 : f32
    %164 = vector.broadcast %cst_69 : f32 to vector<8x1xf32>
    %165 = arith.divf %163, %164 : vector<8x1xf32>
    %166 = vector.broadcast %158 : vector<8x1xf32> to vector<8x32xf32>
    %167 = arith.subf %154, %166 : vector<8x32xf32>
    %cst_70 = arith.constant 9.99999974E-6 : f32
    %168 = vector.broadcast %cst_70 : f32 to vector<8x1xf32>
    %169 = arith.addf %165, %168 : vector<8x1xf32>
    %170 = math.rsqrt %169 : vector<8x1xf32>
    %171 = vector.broadcast %170 : vector<8x1xf32> to vector<8x32xf32>
    %172 = arith.mulf %167, %171 : vector<8x32xf32>
    %173 = vector.broadcast %112 : vector<1x32xf32> to vector<8x32xf32>
    %174 = arith.mulf %172, %173 : vector<8x32xf32>
    %175 = vector.broadcast %113 : vector<1x32xf32> to vector<8x32xf32>
    %176 = arith.addf %174, %175 : vector<8x32xf32>
    %177 = arith.truncf %176 : vector<8x32xf32> to vector<8x32xbf16>
    %c1_71 = arith.constant 1 : index
    %c0_72 = arith.constant 0 : index
    %c0_73 = arith.constant 0 : index
    %178 = vector.load %arg5[%c1_71, %c0_72, %c0_73] : memref<2x32x64xbf16, #tpu.memory_space<vmem>>, vector<1x32x64xbf16>
    %179 = vector.shape_cast %178 : vector<1x32x64xbf16> to vector<32x64xbf16>
    %cst_74 = arith.constant dense<0.000000e+00> : vector<8x64xf32>
    %180 = tpu.matmul %177, %179, %cst_74 {dimension_numbers = #tpu.dot_dimension_numbers<[1], [0], [0], [1], [0, 0, 1, 1], [], []>} : vector<8x32xbf16>, vector<32x64xbf16>, vector<8x64xf32> -> vector<8x64xf32>
    %c1_75 = arith.constant 1 : index
    %c0_76 = arith.constant 0 : index
    %c0_77 = arith.constant 0 : index
    %181 = vector.load %arg6[%c1_75, %c0_76, %c0_77] : memref<2x1x64xf32, #tpu.memory_space<vmem>>, vector<1x1x64xf32>
    %182 = vector.shape_cast %181 : vector<1x1x64xf32> to vector<1x64xf32>
    %183 = vector.broadcast %182 : vector<1x64xf32> to vector<8x64xf32>
    %184 = arith.addf %180, %183 : vector<8x64xf32>
    %cst_78 = arith.constant 0.000000e+00 : f32
    %185 = vector.broadcast %cst_78 : f32 to vector<8x64xf32>
    %186 = arith.maximumf %184, %185 : vector<8x64xf32>
    %187 = arith.truncf %186 : vector<8x64xf32> to vector<8x64xbf16>
    %c1_79 = arith.constant 1 : index
    %c0_80 = arith.constant 0 : index
    %c0_81 = arith.constant 0 : index
    %188 = vector.load %arg7[%c1_79, %c0_80, %c0_81] : memref<2x64x32xbf16, #tpu.memory_space<vmem>>, vector<1x64x32xbf16>
    %189 = vector.shape_cast %188 : vector<1x64x32xbf16> to vector<64x32xbf16>
    %cst_82 = arith.constant dense<0.000000e+00> : vector<8x32xf32>
    %190 = tpu.matmul %187, %189, %cst_82 {dimension_numbers = #tpu.dot_dimension_numbers<[1], [0], [0], [1], [0, 0, 1, 1], [], []>} : vector<8x64xbf16>, vector<64x32xbf16>, vector<8x32xf32> -> vector<8x32xf32>
    %191 = vector.broadcast %114 : vector<1x32xf32> to vector<8x32xf32>
    %192 = arith.addf %190, %191 : vector<8x32xf32>
    %193 = arith.addf %176, %192 : vector<8x32xf32>
    %cst_83 = arith.constant dense<0.000000e+00> : vector<8xf32>
    %194 = vector.multi_reduction <add>, %193, %cst_83 [1] : vector<8x32xf32> to vector<8xf32>
    %195 = vector.shape_cast %194 : vector<8xf32> to vector<8x1xf32>
    %cst_84 = arith.constant 3.200000e+01 : f32
    %196 = vector.broadcast %cst_84 : f32 to vector<8x1xf32>
    %197 = arith.divf %195, %196 : vector<8x1xf32>
    %198 = vector.broadcast %197 : vector<8x1xf32> to vector<8x32xf32>
    %199 = arith.subf %193, %198 : vector<8x32xf32>
    %200 = arith.mulf %199, %199 : vector<8x32xf32>
    %cst_85 = arith.constant dense<0.000000e+00> : vector<8xf32>
    %201 = vector.multi_reduction <add>, %200, %cst_85 [1] : vector<8x32xf32> to vector<8xf32>
    %202 = vector.shape_cast %201 : vector<8xf32> to vector<8x1xf32>
    %cst_86 = arith.constant 3.200000e+01 : f32
    %203 = vector.broadcast %cst_86 : f32 to vector<8x1xf32>
    %204 = arith.divf %202, %203 : vector<8x1xf32>
    %205 = vector.broadcast %197 : vector<8x1xf32> to vector<8x32xf32>
    %206 = arith.subf %193, %205 : vector<8x32xf32>
    %cst_87 = arith.constant 9.99999974E-6 : f32
    %207 = vector.broadcast %cst_87 : f32 to vector<8x1xf32>
    %208 = arith.addf %204, %207 : vector<8x1xf32>
    %209 = math.rsqrt %208 : vector<8x1xf32>
    %210 = vector.broadcast %209 : vector<8x1xf32> to vector<8x32xf32>
    %211 = arith.mulf %206, %210 : vector<8x32xf32>
    %212 = vector.broadcast %115 : vector<1x32xf32> to vector<8x32xf32>
    %213 = arith.mulf %211, %212 : vector<8x32xf32>
    %214 = vector.broadcast %116 : vector<1x32xf32> to vector<8x32xf32>
    %215 = arith.addf %213, %214 : vector<8x32xf32>
    %c0_88 = arith.constant 0 : index
    %c0_89 = arith.constant 0 : index
    %c0_90 = arith.constant 0 : index
    %216 = vector.load %arg9[%c0_88, %c0_89, %c0_90] : memref<1x8x32xf32, #tpu.memory_space<vmem>>, vector<1x8x32xf32>
    %217 = vector.shape_cast %216 : vector<1x8x32xf32> to vector<8x32xf32>
    %218 = vector.shape_cast %215 : vector<8x32xf32> to vector<1x8x32xf32>
    tpu.vector_store %arg9[%c0_88, %c0_89, %c0_90], %218 {strides = array<i32>} : memref<1x8x32xf32, #tpu.memory_space<vmem>>, vector<1x8x32xf32>,
    return
  }
  func.func @transform_0(%arg0: i32) -> (i32, i32, i32) {
    %c0_i32 = arith.constant 0 : i32
    %c0_i32_0 = arith.constant 0 : i32
    %c0_i32_1 = arith.constant 0 : i32
    return %arg0, %c0_i32, %c0_i32_0 : i32, i32, i32
  }
  func.func @transform_1(%arg0: i32) -> (i32, i32, i32, i32) {
    %c0_i32 = arith.constant 0 : i32
    %c0_i32_0 = arith.constant 0 : i32
    %c0_i32_1 = arith.constant 0 : i32
    %c0_i32_2 = arith.constant 0 : i32
    %c0_i32_3 = arith.constant 0 : i32
    return %c0_i32, %c0_i32_0, %c0_i32_1, %c0_i32_2 : i32, i32, i32, i32
  }
  func.func @transform_2(%arg0: i32) -> (i32, i32, i32, i32) {
    %c0_i32 = arith.constant 0 : i32
    %c0_i32_0 = arith.constant 0 : i32
    %c0_i32_1 = arith.constant 0 : i32
    %c0_i32_2 = arith.constant 0 : i32
    %c0_i32_3 = arith.constant 0 : i32
    return %c0_i32, %c0_i32_0, %c0_i32_1, %c0_i32_2 : i32, i32, i32, i32
  }
  func.func @transform_3(%arg0: i32) -> (i32, i32, i32, i32) {
    %c0_i32 = arith.constant 0 : i32
    %c0_i32_0 = arith.constant 0 : i32
    %c0_i32_1 = arith.constant 0 : i32
    %c0_i32_2 = arith.constant 0 : i32
    %c0_i32_3 = arith.constant 0 : i32
    return %c0_i32, %c0_i32_0, %c0_i32_1, %c0_i32_2 : i32, i32, i32, i32
  }
  func.func @transform_4(%arg0: i32) -> (i32, i32, i32) {
    %c0_i32 = arith.constant 0 : i32
    %c0_i32_0 = arith.constant 0 : i32
    %c0_i32_1 = arith.constant 0 : i32
    %c0_i32_2 = arith.constant 0 : i32
    return %c0_i32, %c0_i32_0, %c0_i32_1 : i32, i32, i32
  }
  func.func @transform_5(%arg0: i32) -> (i32, i32, i32) {
    %c0_i32 = arith.constant 0 : i32
    %c0_i32_0 = arith.constant 0 : i32
    %c0_i32_1 = arith.constant 0 : i32
    %c0_i32_2 = arith.constant 0 : i32
    return %c0_i32, %c0_i32_0, %c0_i32_1 : i32, i32, i32
  }
  func.func @transform_6(%arg0: i32) -> (i32, i32, i32) {
    %c0_i32 = arith.constant 0 : i32
    %c0_i32_0 = arith.constant 0 : i32
    %c0_i32_1 = arith.constant 0 : i32
    %c0_i32_2 = arith.constant 0 : i32
    return %c0_i32, %c0_i32_0, %c0_i32_1 : i32, i32, i32
  }
  func.func @transform_7(%arg0: i32) -> (i32, i32, i32) {
    %c0_i32 = arith.constant 0 : i32
    %c0_i32_0 = arith.constant 0 : i32
    %c0_i32_1 = arith.constant 0 : i32
    %c0_i32_2 = arith.constant 0 : i32
    return %c0_i32, %c0_i32_0, %c0_i32_1 : i32, i32, i32
  }
  func.func @transform_8(%arg0: i32) -> (i32, i32, i32) {
    %c0_i32 = arith.constant 0 : i32
    %c0_i32_0 = arith.constant 0 : i32
    %c0_i32_1 = arith.constant 0 : i32
    return %arg0, %c0_i32, %c0_i32_0 : i32, i32, i32
  }
}

</mosaic_0001>

<bundles_post_ra>
// kernel: tpu_custom_call.1
= control target key start
LH: loop header
LB: loop body
LE: loop exit
PB: predicated region body
PF: predicated region fallthrough
CT: control target
= control target key end

     0   :  { %13 = vsyncpa [#allocation3], 0  ;;  %s2421_s0 = inlined_call_operand.vmem [shape: f32[2,8,32], index: 0, kind: input, shape index: {}]   ;;  %s2422_s1 = inlined_call_operand.vmem [shape: bf16[2,4,32,24], index: 1, kind: input, shape index: {}]   ;;  %s2423_s2 = inlined_call_operand.vmem [shape: f32[2,4,1,24], index: 2, kind: input, shape index: {}]   ;;  %s2424_s3 = inlined_call_operand.vmem [shape: bf16[2,4,8,32], index: 3, kind: input, shape index: {}]   ;;  %s2425_s4 = inlined_call_operand.vmem [shape: bf16[2,32,64], index: 4, kind: input, shape index: {}]   ;;  %s2426_s5 = inlined_call_operand.vmem [shape: f32[2,1,64], index: 5, kind: input, shape index: {}]   ;;  %s2427_s6 = inlined_call_operand.vmem [shape: bf16[2,64,32], index: 6, kind: input, shape index: {}]   ;;  %s2428_s7 = inlined_call_operand.vmem [shape: f32[2,6,32], index: 7, kind: input, shape index: {}]   ;;  %s2429_s8 = inlined_call_operand.hbm [shape: f32[2,8,32], index: 8, kind: output, shape index: {}]  }
   0x1   :  { %15 = vsyncpa [#allocation3 + $0x1], 0  ;;  %s2035_s27 = smov 0   ;;  %s2037_s28 = smov 0  }
   0x2   :  { %s2039_s29 = smov 0   ;;  %s2041_s30 = smov 0  }
   0x3 LB: > { %s2056_s9 = sadd.s32 4294967295, %s1985_s30   ;;  %s1605_s10 = sadd.s32 4294967294, %s1985_s30   ;;  %s1985_s30 = sphi %s2041_s30, %s2435_s30   ;;  %s1981_s29 = sphi %s2039_s29, %s2434_s29   ;;  %s1977_s28 = sphi %s2037_s28, %s2433_s28   ;;  %s1973_s27 = sphi %s2035_s27, %s2432_s27  }
   0x4   : > { %s2060_s11 = sadd.s32 1, %s1985_s30   ;;  %s201_s12 = sadd.s32 1, %s1981_s29 }
   0x5   : > { %s198_s13 = ssub.s32 %s1985_s30, %s2060_s11  ;;  %p211_p0 = scmp.ne.s32.totalorder %s1981_s29, %s1977_s28 }
   0x6   : > { %p199_p1 = scmp.eq.s32.totalorder %s198_s13, 0  ;;  %p212_p2 = scmp.eq.s32.totalorder %s2056_s9, 1 }
   0x7   : > { %p217_p3 = scmp.ne.s32.totalorder %s1977_s28, %s1973_s27  ;;  %p218_p4 = scmp.eq.s32.totalorder %s1605_s10, 1 }
   0x8   : > { %s2071_s14 = scalar_select %p199_p1, %s1981_s29, %s201_s12  }
   0x9   : > { %p2073_p5 = por %p212_p2, %p211_p0  ;;  %p2077_p6 = por %p218_p4, %p217_p3 }
   0xa   : > { %p1608_p7 = scmp.ge.s32.totalorder %s1985_s30, 1  ;;  %p264_p8 = scmp.lt.s32.totalorder %s1985_s30, 3 }
   0xc   : > { %p265_p9 = pnand %p1608_p7, %p264_p8 }
   0xd   : > { %p297_p10 = scmp.lt.s32.totalorder (!%p265_p9), %s2056_s9, 1  ;;  %s1987_s20 = smov (!%p265_p9), 120  }
   0xe   : > { %268 = sbr.rel (%p265_p9) target bundleno = 3510 (0xdb6), region = 52 }
  0x13   : > { %v1802_v0 = vld [vmem:[%s2422_s1 + $0x8] sm:$0xff]  ;;  %v1808_v2 = vld [vmem:[%s2422_s1 + $0x38] sm:$0xff]  ;;  %v1801_v3 = vld [vmem:[%s2422_s1] sm:$0xff]  ;;  %s298_s18 = scalar_select %p297_p10, %s2056_s9, 1  ;;  %vm349_vm0 = vcmask 261120   ;;  %vm450_vm1 = vcmask 64512  }
  0x14   : > { %v1806_v1 = vld [vmem:[%s2422_s1 + $0x28] sm:$0xff]  ;;  %v1804_v4 = vld [vmem:[%s2422_s1 + $0x18] sm:$0xff]  ;;  %359 = vmatpush.bf16.msra.mxu0 %v1802_v0  ;;  %v1805_v5 = vld [vmem:[%s2422_s1 + $0x20] sm:$0xff]  ;;  %434 = vmatpush.bf16.msra.mxu3 %v1808_v2  ;;  %vm595_vm2 = vcmask 1043456   ;;  %vm874_vm7 = vcmask 523264  }
  0x15   : > { %409 = vmatpush.bf16.msra.mxu2 %v1806_v1  ;;  %v1807_v6 = vld [vmem:[%s2422_s1 + $0x30] sm:$0xff]  ;;  %384 = vmatpush.bf16.msra.mxu1 %v1804_v4  ;;  %s1610_s21 = sshll.u32 %s298_s18, 3  ;;  %v1871_v10 = vld [vmem:[%s2423_s2] ss:$0 sm:$0xff]  ;;  %v1872_v11 = vld [vmem:[%s2423_s2 + $0x1] ss:$0 sm:$0xff] }
  0x16   : > { %v1803_v7 = vld [vmem:[%s2422_s1 + $0x10] sm:$0xff]  ;;  %s300_s24 = scalar_lea.vmem %s2421_s0, %s1610_s21  ;;  %v1873_v17 = vld [vmem:[%s2423_s2 + $0x2] ss:$0 sm:$0xff]  ;;  %v1874_v18 = vld [vmem:[%s2423_s2 + $0x3] ss:$0 sm:$0xff]  ;;  %s1988_s21 = smov 112  }
  0x17   : > { %v2112_v8 = vld [vmem:[%s300_s24] sm:$0xff]  ;;  %s294_s24 = sand.u32 1, %s1977_s28  }
  0x18   : > { %360 = vmatpush.bf16.msra.mxu0 %v1801_v3  ;;  %435 = vmatpush.bf16.msra.mxu3 %v1807_v6  ;;  %v304_v9 = vpack.c.bf16 %v2112_v8, %v2112_v8  ;;  %s1609_s25 = sshll.u32 %s294_s24, 3 }
  0x19   : > { %410 = vmatpush.bf16.msra.mxu2 %v1805_v5  ;;  %385 = vmatpush.bf16.msra.mxu1 %v1803_v7  ;;  %s296_s12 = scalar_lea.vmem [#allocation2], %s1609_s25  ;;  %s1943_s25 = scalar_lea.hbm %s2429_s8, 16 }
  0x1a   : > { %s1543_s13 = sshll.u32 %s296_s12, 4  ;;  %s1544_s13 = int_to_ptr.vmem [resolvable:$true] %s1543_s13 }
  0x1b   : > { %1619 = vmatmul.msk.bf16.vlgmr.msra.gmra.mxu0 %vm349_vm0, %v304_v9  ;;  %1646 = vmatmul.msk.bf16.vlgmr.msra.gmra.mxu3 %vm349_vm0, %v304_v9 }
  0x1c   : > { %1637 = vmatmul.msk.bf16.vlgmr.msra.gmra.mxu2 %vm349_vm0, %v304_v9  ;;  %1628 = vmatmul.msk.bf16.vlgmr.msra.gmra.mxu1 %vm349_vm0, %v304_v9 }
  0x98   : > { %v362_v12 = vpop.f32.mrf.mxu0 }
  0x99   : > { %v363_v13 = vadd.f32 %v1871_v10, %v362_v12  ;;  %v387_v14 = vpop.f32.mrf.mxu1 }
  0x9a   : > { %v388_v15 = vadd.f32 %v1872_v11, %v387_v14 }
  0x9b   : > { %v441_v16 = vpack.c.bf16 %v363_v13, %v363_v13 }
  0x9c   : > { %v442_v19 = vpack.c.bf16 %v388_v15, %v388_v15 }
  0x9d   : > { %v446_v20 = vunpack.c.l.b16 %v441_v16 }
  0x9e   : > { %v437_v23 = vpop.f32.mrf.mxu3  ;;  %v471_v27 = vunpack.c.l.b16 %v442_v19 }
  0x9f   : > { %v412_v21 = vpop.f32.mrf.mxu2  ;;  %v2132_v24 = vpack.c.b16 %v446_v20, %v446_v20  ;;  %v438_v25 = vadd.f32 %v1874_v18, %v437_v23 }
  0xa0   : > { %v413_v22 = vadd.f32 %v1873_v17, %v412_v21  ;;  %v364_v26 = vpop.f32.mrf.mxu0  ;;  %v472_v32 = vpack.c.b16 %v471_v27, %v471_v27 }
  0xa1   : > { %448 = vrot.lane.b32.xlu1 %v2132_v24, %s1987_s20  ;;  %v389_v29 = vpop.f32.mrf.mxu1  ;;  %v444_v30 = vpack.c.bf16 %v438_v25, %v438_v25 }
  0xa2   : > { %v443_v28 = vpack.c.bf16 %v413_v22, %v413_v22 }
  0xa3   : > { %v519_v35 = vunpack.c.l.b16 %v444_v30 }
  0xa4   : > { %v495_v31 = vunpack.c.l.b16 %v443_v28 }
  0xa5   : > { %v520_v37 = vpack.c.b16 %v519_v35, %v519_v35 }
  0xa6   : > { %v496_v33 = vpack.c.b16 %v495_v31, %v495_v31  ;;  %v439_v36 = vpop.f32.mrf.mxu3 }
  0xa7   : > { %v414_v34 = vpop.f32.mrf.mxu2 }
  0xa8   : > { %497 = vrot.lane.b32.xlu0 %v496_v33, %s1987_s20 }
  0xa9   : > { %473 = vrot.lane.b32.xlu1 %v472_v32, %s1987_s20 }
  0xb0   : > { %521 = vrot.lane.b32.xlu0 %v520_v37, %s1987_s20 }
 0x113   : > { %v449_v38 = vpop.permute.xlu1 %448 }
 0x114   : > { %v455_v39 = vsel %vm450_vm1, %v449_v38, 0 }
 0x115   : > { %464 = vmatpush.bf16.xpose.msrb.mxu0 %v455_v39  ;;  %v680_v39 = vld [vmem:[%s2424_s3 + $0x4] sm:$0xf] }
 0x11a   : > { %v498_v40 = vpop.permute.xlu0 %497 }
 0x11b   : > { %v503_v41 = vsel %vm450_vm1, %v498_v40, 0  ;;  %v474_v42 = vpop.permute.xlu1 %473  ;;  %v706_v40 = vsel %vm595_vm2, %v680_v39, 0 }
 0x11c   : > { %512 = vmatpush.bf16.xpose.msrb.mxu2 %v503_v41  ;;  %1647 = vmatmul.msk.bf16.vlgmr.msrb.gmra.mxu0 %vm450_vm1, %v441_v16  ;;  %v479_v43 = vsel %vm450_vm1, %v474_v42, 0  ;;  %v681_v41 = vld [vmem:[%s2424_s3 + $0x8] sm:$0xf] }
 0x11d   : > { %488 = vmatpush.bf16.xpose.msrb.mxu1 %v479_v43  ;;  %v725_v42 = vsel %vm595_vm2, %v681_v41, 0  ;;  %v682_v43 = vld [vmem:[%s2424_s3 + $0xc] sm:$0xf] }
 0x122   : > { %v522_v44 = vpop.permute.xlu0 %521 }
 0x123   : > { %1649 = vmatmul.msk.bf16.vlgmr.msrb.gmra.mxu2 %vm450_vm1, %v443_v28  ;;  %v527_v45 = vsel %vm450_vm1, %v522_v44, 0  ;;  %v679_v44 = vld [vmem:[%s2424_s3] sm:$0xf] }
 0x124   : > { %536 = vmatpush.bf16.xpose.msrb.mxu3 %v527_v45  ;;  %1648 = vmatmul.msk.bf16.vlgmr.msrb.gmra.mxu1 %vm450_vm1, %v442_v19  ;;  %v744_v45 = vsel %vm595_vm2, %v682_v43, 0 }
 0x12b   : > { %1650 = vmatmul.msk.bf16.vlgmr.msrb.gmra.mxu3 %vm450_vm1, %v444_v30 }
 0x199   : > { %v466_v46 = vpop.f32.mrf.mxu0 }
 0x19a   : > { %v542_v47 = vsel %vm450_vm1, %v466_v46, -inf }
 0x19b   : > { %543 = vmax.xlane.f32.xlu0 %v542_v47 }
 0x1a1   : > { %v468_v48 = vpop.f32.mrf.mxu0  ;;  %v490_v49 = vpop.f32.mrf.mxu1 }
 0x1a2   : > { %v545_v50 = vsel %vm450_vm1, %v490_v49, -inf }
 0x1a3   : > { %546 = vmax.xlane.f32.xlu1 %v545_v50 }
 0x1a6   : > { %v514_v51 = vpop.f32.mrf.mxu2 }
 0x1a7   : > { %v548_v52 = vsel %vm450_vm1, %v514_v51, -inf }
 0x1a8   : > { %549 = vmax.xlane.f32.xlu2 %v548_v52 }
 0x1a9   : > { %v492_v53 = vpop.f32.mrf.mxu1 }
 0x1ae   : > { %v516_v54 = vpop.f32.mrf.mxu2  ;;  %v538_v55 = vpop.f32.mrf.mxu3 }
 0x1af   : > { %v551_v56 = vsel %vm450_vm1, %v538_v55, -inf }
 0x1b0   : > { %552 = vmax.xlane.f32.xlu2 %v551_v56 }
 0x1b6   : > { %v540_v57 = vpop.f32.mrf.mxu3 }
 0x1bc   : > { %654 = vrot.lane.b32.xlu1 %v520_v37, %s1988_s21 }
 0x1c4   : > { %612 = vrot.lane.b32.xlu1 %v472_v32, %s1988_s21 }
 0x1c8   : > { %633 = vrot.lane.b32.xlu2 %v496_v33, %s1988_s21 }
 0x20e   : > { %v544_v1 = vpop.xlane.xlu0 %543 }
 0x20f   : > { %v554_v6 = vsub.f32 %v466_v46, %v544_v1  ;;  %v687_v46 = vsel %vm595_vm2, %v679_v44, 0  ;;  %v2193_v1 = vld [vmem:[%s2428_s7] sm:$0x3f] }
 0x211   : > { %v558_v10 = vmul.f32 1.442695, %v554_v6 }
 0x216   : > { %v547_v58 = vpop.xlane.xlu1 %546 }
 0x217   : > { %v555_v59 = vsub.f32 %v490_v49, %v547_v58 }
 0x219   : > { %v560_v60 = vmul.f32 1.442695, %v555_v59 }
 0x21b   : > { %v550_v61 = vpop.xlane.xlu2 %549  ;;  %1881 = vpow2.f32 %v560_v60 }
 0x21c   : > { %v556_v62 = vsub.f32 %v514_v51, %v550_v61 }
 0x21e   : > { %v562_v63 = vmul.f32 1.442695, %v556_v62 }
 0x220   : > { %1883 = vpow2.f32 %v562_v63 }
 0x221   : > { %v1882_v0 = vpop.eup %1881 }
 0x222   : > { %v569_v3 = vsel %vm450_vm1, %v1882_v0, 0.0 }
 0x223   : > { %v553_v2 = vpop.xlane.xlu2 %552  ;;  %570 = vadd.xlane.f32.xlu0 %v569_v3 }
 0x224   : > { %v557_v4 = vsub.f32 %v538_v55, %v553_v2 }
 0x226   : > { %v1884_v5 = vpop.eup %1883  ;;  %v564_v7 = vmul.f32 1.442695, %v557_v4 }
 0x227   : > { %v572_v9 = vsel %vm450_vm1, %v1884_v5, 0.0 }
 0x228   : > { %1885 = vpow2.f32 %v564_v7  ;;  %573 = vadd.xlane.f32.xlu2 %v572_v9  ;;  %v766_v7 = vperm.slane %v2193_v1, 0 }
 0x229   : > { %1887 = vpow2.f32 %v558_v10 }
 0x22b   : > { %v634_v11 = vpop.permute.xlu2 %633 }
 0x22c   : > { %v639_v12 = vsel %vm595_vm2, %v634_v11, 0 }
 0x22d   : > { %648 = vmatpush.bf16.msra.mxu2 %v639_v12 }
 0x22e   : > { %v1886_v13 = vpop.eup %1885  ;;  %v655_v14 = vpop.permute.xlu1 %654 }
 0x22f   : > { %v575_v15 = vsel %vm450_vm1, %v1886_v13, 0.0  ;;  %v660_v16 = vsel %vm595_vm2, %v655_v14, 0  ;;  %v1888_v17 = vpop.eup %1887 }
 0x230   : > { %576 = vadd.xlane.f32.xlu2 %v575_v15  ;;  %669 = vmatpush.bf16.msra.mxu3 %v660_v16  ;;  %v566_v19 = vsel %vm450_vm1, %v1888_v17, 0.0  ;;  %v1989_v16 = vmov 32.0  }
 0x231   : > { %734 = vmatpush.bf16.msrb.mxu2 %v725_v42  ;;  %v800_v42 = vperm.slane %v2193_v1, 2 }
 0x234   : > { %753 = vmatpush.bf16.msrb.mxu3 %v744_v45 }
 0x236   : > { %v613_v18 = vpop.permute.xlu1 %612 }
 0x237   : > { %v618_v20 = vsel %vm595_vm2, %v613_v18, 0  ;;  %590 = vrot.lane.b32.xlu0 %v2132_v24, %s1988_s21 }
 0x238   : > { %567 = vadd.xlane.f32.xlu2 %v566_v19  ;;  %627 = vmatpush.bf16.msra.mxu1 %v618_v20 }
 0x23c   : > { %715 = vmatpush.bf16.msrb.mxu1 %v706_v40  ;;  %v798_v40 = vperm.slane %v2193_v1, 1 }
 0x296   : > { %v571_v21 = vpop.xlane.xlu0 %570 }
 0x297   : > { %1889 = vrcp.f32 %v571_v21 }
 0x29b   : > { %v574_v22 = vpop.xlane.xlu2 %573 }
 0x29c   : > { %1891 = vrcp.f32 %v574_v22 }
 0x29d   : > { %v1890_v23 = vpop.eup %1889 }
 0x29e   : > { %v583_v25 = vmul.f32 %v1890_v23, %v1882_v0 }
 0x2a0   : > { %v587_v26 = vpack.c.bf16 %v583_v25, %v583_v25 }
 0x2a2   : > { %v1892_v27 = vpop.eup %1891  ;;  %1652 = vmatmul.msk.bf16.vlgmr.msra.gmra.mxu1 %vm450_vm1, %v587_v26 }
 0x2a3   : > { %v584_v28 = vmul.f32 %v1892_v27, %v1884_v5  ;;  %v577_v29 = vpop.xlane.xlu2 %576 }
 0x2a4   : > { %1893 = vrcp.f32 %v577_v29  ;;  %v1809_v29 = vld [vmem:[%s2425_s4] sm:$0xff] }
 0x2a5   : > { %v588_v30 = vpack.c.bf16 %v584_v28, %v584_v28  ;;  %v1810_v28 = vld [vmem:[%s2425_s4 + $0x8] sm:$0xff] }
 0x2a7   : > { %1653 = vmatmul.msk.bf16.vlgmr.msra.gmra.mxu2 %vm450_vm1, %v588_v30  ;;  %v1814_v30 = vld [vmem:[%s2427_s6 + $0x18] sm:$0xff] }
 0x2a8   : > { %882 = vmatpush.bf16.msra.mxu1 %v1814_v30 }
 0x2a9   : > { %v591_v32 = vpop.permute.xlu0 %590 }
 0x2aa   : > { %v1894_v31 = vpop.eup %1893  ;;  %v597_v33 = vsel %vm595_vm2, %v591_v32, 0 }
 0x2ab   : > { %v585_v24 = vmul.f32 %v1894_v31, %v1886_v13  ;;  %v568_v34 = vpop.xlane.xlu2 %567  ;;  %606 = vmatpush.bf16.msra.mxu0 %v597_v33 }
 0x2ac   : > { %1895 = vrcp.f32 %v568_v34 }
 0x2ad   : > { %v589_v35 = vpack.c.bf16 %v585_v24, %v585_v24  ;;  %1897 = vrcp.f32 %v1989_v16  ;;  %v1813_v24 = vld [vmem:[%s2427_s6 + $0x10] sm:$0xff] }
 0x2ae   : > { %883 = vmatpush.bf16.msra.mxu1 %v1813_v24  ;;  %v1879_v24 = vld [vmem:[%s2423_s2 + $0x5] ss:$0 sm:$0xff] }
 0x2af   : > { %1654 = vmatmul.msk.bf16.vlgmr.msra.gmra.mxu3 %vm450_vm1, %v589_v35  ;;  %696 = vmatpush.bf16.msrb.mxu0 %v687_v46 }
 0x2b2   : > { %v1896_v36 = vpop.eup %1895 }
 0x2b3   : > { %v582_v37 = vmul.f32 %v1896_v36, %v1888_v17  ;;  %v1898_v17 = vpop.eup %1897 }
 0x2b4   : > { %v773_v18 = vmul.f32 32.0, %v1898_v17  ;;  %vm777_vm3 = vweird.f32 %v1898_v17 }
 0x2b5   : > { %v586_v38 = vpack.c.bf16 %v582_v37, %v582_v37 }
 0x2b6   : > { %v774_v19 = vsub.f32 1.0, %v773_v18 }
 0x2b7   : > { %1651 = vmatmul.msk.bf16.vlgmr.msra.gmra.mxu0 %vm450_vm1, %v586_v38 }
 0x2b8   : > { %v775_v20 = vmul.f32 %v1898_v17, %v774_v19  ;;  %832 = vmatpush.bf16.msra.mxu0 %v1810_v28 }
 0x2ba   : > { %v776_v21 = vadd.f32 %v1898_v17, %v775_v20 }
 0x2bc   : > { %v2200_v22 = vsel %vm777_vm3, %v1898_v17, %v776_v21  ;;  %833 = vmatpush.bf16.msra.mxu0 %v1809_v29  ;;  %v914_v21 = vperm.slane %v2193_v1, 4  ;;  %v1876_v29 = vld [vmem:[%s2423_s2 + $0x6] ss:$0 sm:$0xff] }
 0x31f   : > { %v629_v47 = vpop.f32.mrf.mxu1 }
 0x320   : > { %v676_v48 = vpack.c.bf16 %v629_v47, %v629_v47  ;;  %v1812_v47 = vld [vmem:[%s2427_s6 + $0x8] sm:$0xff] }
 0x321   : > { %884 = vmatpush.bf16.msra.mxu1 %v1812_v47 }
 0x322   : > { %1656 = vmatmul.msk.bf16.vlgmr.msrb.gmra.mxu1 %vm450_vm1, %v676_v48  ;;  %v1811_v48 = vld [vmem:[%s2427_s6] sm:$0xff] }
 0x325   : > { %885 = vmatpush.bf16.msra.mxu1 %v1811_v48 }
 0x327   : > { %v631_v49 = vpop.f32.mrf.mxu1 }
 0x328   : > { %v1875_v49 = vld [vmem:[%s2426_s5] ss:$0 sm:$0xff] }
 0x32a   : > { %v650_v50 = vpop.f32.mrf.mxu2 }
 0x32b   : > { %v677_v51 = vpack.c.bf16 %v650_v50, %v650_v50 }
 0x32d   : > { %1657 = vmatmul.msk.bf16.vlgmr.msrb.gmra.mxu2 %vm450_vm1, %v677_v51 }
 0x332   : > { %v652_v52 = vpop.f32.mrf.mxu2  ;;  %v671_v53 = vpop.f32.mrf.mxu3 }
 0x333   : > { %v678_v54 = vpack.c.bf16 %v671_v53, %v671_v53 }
 0x334   : > { %v608_v55 = vpop.f32.mrf.mxu0 }
 0x335   : > { %v675_v56 = vpack.c.bf16 %v608_v55, %v608_v55  ;;  %1658 = vmatmul.msk.bf16.vlgmr.msrb.gmra.mxu3 %vm450_vm1, %v678_v54  ;;  %v849_v55 = vperm.slane %v2193_v1, 3 }
 0x337   : > { %1655 = vmatmul.msk.bf16.vlgmr.msrb.gmra.mxu0 %vm450_vm1, %v675_v56 }
 0x33a   : > { %v673_v57 = vpop.f32.mrf.mxu3 }
 0x33c   : > { %v610_v58 = vpop.f32.mrf.mxu0 }
 0x39f   : > { %v717_v59 = vpop.f32.mrf.mxu1 }
 0x3a0   : > { %v760_v63 = vsel %vm349_vm0, %v717_v59, 0.0 }
 0x3a7   : > { %v719_v60 = vpop.f32.mrf.mxu1 }
 0x3b0   : > { %v736_v61 = vpop.f32.mrf.mxu2 }
 0x3b1   : > { %v762_v3 = vsel %vm349_vm0, %v736_v61, 0.0 }
 0x3b4   : > { %v698_v62 = vpop.f32.mrf.mxu0 }
 0x3b5   : > { %v759_v0 = vsel %vm349_vm0, %v698_v62, 0.0 }
 0x3b6   : > { %v761_v2 = vadd.f32 %v760_v63, %v759_v0 }
 0x3b8   : > { %v738_v4 = vpop.f32.mrf.mxu2  ;;  %v755_v5 = vpop.f32.mrf.mxu3  ;;  %v763_v6 = vadd.f32 %v762_v3, %v761_v2  ;;  %v1816_v3 = vld [vmem:[%s2422_s1 + $0x48] sm:$0xff] }
 0x3b9   : > { %v764_v9 = vsel %vm349_vm0, %v755_v5, 0.0  ;;  %v1818_v4 = vld [vmem:[%s2422_s1 + $0x58] sm:$0xff]  ;;  %v1820_v5 = vld [vmem:[%s2422_s1 + $0x68] sm:$0xff]  ;;  %976 = vmatpush.bf16.msra.mxu2 %v1816_v3 }
 0x3ba   : > { %v765_v10 = vadd.f32 %v764_v9, %v763_v6  ;;  %v1822_v6 = vld [vmem:[%s2422_s1 + $0x78] sm:$0xff]  ;;  %1001 = vmatpush.bf16.msra.mxu3 %v1818_v4  ;;  %1026 = vmatpush.bf16.msrb.mxu0 %v1820_v5  ;;  %v1817_v9 = vld [vmem:[%s2422_s1 + $0x50] sm:$0xff] }
 0x3bb   : > { %1051 = vmatpush.bf16.msrb.mxu1 %v1822_v6 }
 0x3bc   : > { %v767_v11 = vadd.f32 %v766_v7, %v765_v10  ;;  %v700_v12 = vpop.f32.mrf.mxu0  ;;  %v1815_v7 = vld [vmem:[%s2422_s1 + $0x40] sm:$0xff] }
 0x3bd   : > { %v1819_v10 = vld [vmem:[%s2422_s1 + $0x60] sm:$0xff]  ;;  %977 = vmatpush.bf16.msra.mxu2 %v1815_v7 }
 0x3be   : > { %v768_v13 = vadd.f32 %v767_v11, %v2112_v8  ;;  %v1821_v11 = vld [vmem:[%s2422_s1 + $0x70] sm:$0xff]  ;;  %1002 = vmatpush.bf16.msra.mxu3 %v1817_v9  ;;  %1027 = vmatpush.bf16.msrb.mxu0 %v1819_v10 }
 0x3bf   : > { %1052 = vmatpush.bf16.msrb.mxu1 %v1821_v11 }
 0x3c0   : > { %v757_v14 = vpop.f32.mrf.mxu3  ;;  %v769_v15 = vsel %vm349_vm0, %v768_v13, 0.0 }
 0x3c1   : > { %770 = vadd.xlane.f32.xlu0 %v769_v15 }
 0x434   : > { %v771_v23 = vpop.xlane.xlu0 %770 }
 0x435   : > { %v779_v25 = vmul.f32 %v2200_v22, %v771_v23 }
 0x437   : > { %v780_v26 = vsub.f32 %v768_v13, %v779_v25  ;;  %v916_v25 = vperm.slane %v2193_v1, 5 }
 0x439   : > { %v781_v27 = vmul.f32 %v780_v26, %v780_v26 }
 0x43b   : > { %v782_v8 = vsel %vm349_vm0, %v781_v27, 0.0 }
 0x43c   : > { %783 = vadd.xlane.f32.xlu1 %v782_v8 }
 0x4af   : > { %v784_v31 = vpop.xlane.xlu1 %783 }
 0x4b0   : > { %v785_v32 = vmul.f32 %v784_v31, %v2200_v22 }
 0x4b2   : > { %v786_v33 = vadd.f32 1e-05, %v785_v32  ;;  %v1878_v32 = vld [vmem:[%s2423_s2 + $0x4] ss:$0 sm:$0xff] }
 0x4b4   : > { %1899 = vrsqrt.f32 %v786_v33  ;;  %vm793_vm5 = vweird.f32 %v786_v33 }
 0x4ba   : > { %v1900_v34 = vpop.eup %1899 }
 0x4bb   : > { %v788_v35 = vmul.f32 %v1900_v34, %v786_v33  ;;  %vm794_vm4 = vweird.f32 %v1900_v34 }
 0x4bc   : > { %vm795_vm6 = vmor %vm793_vm5, %vm794_vm4 }
 0x4bd   : > { %v789_v36 = vmul.f32 %v1900_v34, %v788_v35 }
 0x4bf   : > { %v790_v37 = vmul.f32 0.5, %v789_v36 }
 0x4c1   : > { %v791_v38 = vsub.f32 1.5, %v790_v37 }
 0x4c3   : > { %v792_v39 = vmul.f32 %v1900_v34, %v791_v38 }
 0x4c5   : > { %v796_v41 = vsel %vm795_vm6, %v1900_v34, %v792_v39  ;;  %v1877_v34 = vld [vmem:[%s2423_s2 + $0x7] ss:$0 sm:$0xff] }
 0x4c6   : > { %v797_v43 = vmul.f32 %v796_v41, %v780_v26 }
 0x4c8   : > { %v799_v44 = vmul.f32 %v798_v40, %v797_v43 }
 0x4ca   : > { %v801_v45 = vadd.f32 %v800_v42, %v799_v44 }
 0x4cc   : > { %v802_v46 = vpack.c.bf16 %v801_v45, %v801_v45 }
 0x4ce   : > { %1667 = vmatmul.msk.bf16.vlgmr.msra.gmra.mxu0 %vm349_vm0, %v802_v46 }
 0x54b   : > { %v835_v50 = vpop.f32.mrf.mxu0 }
 0x54c   : > { %v836_v51 = vadd.f32 %v1875_v49, %v835_v50 }
 0x54e   : > { %v839_v52 = vmax.f32 %v836_v51, 0.0 }
 0x550   : > { %v840_v53 = vpack.c.bf16 %v839_v52, %v839_v52 }
 0x552   : > { %1684 = vmatmul.msk.bf16.vlgmr.msra.gmra.mxu1 %vm874_vm7, %v840_v53 }
 0x553   : > { %v837_v54 = vpop.f32.mrf.mxu0 }
 0x5cf   : > { %v887_v56 = vpop.f32.mrf.mxu1 }
 0x5d0   : > { %v888_v57 = vadd.f32 %v887_v56, %v849_v55 }
 0x5d2   : > { %v891_v58 = vadd.f32 %v888_v57, %v801_v45 }
 0x5d4   : > { %v892_v59 = vsel %vm349_vm0, %v891_v58, 0.0 }
 0x5d5   : > { %893 = vadd.xlane.f32.xlu2 %v892_v59 }
 0x5d7   : > { %v889_v60 = vpop.f32.mrf.mxu1 }
 0x648   : > { %v894_v61 = vpop.xlane.xlu2 %893 }
 0x649   : > { %v895_v62 = vmul.f32 %v894_v61, %v2200_v22 }
 0x64b   : > { %v896_v63 = vsub.f32 %v891_v58, %v895_v62 }
 0x64d   : > { %v897_v0 = vmul.f32 %v896_v63, %v896_v63 }
 0x64f   : > { %v898_v2 = vsel %vm349_vm0, %v897_v0, 0.0 }
 0x650   : > { %899 = vadd.xlane.f32.xlu2 %v898_v2 }
 0x6c3   : > { %v900_v12 = vpop.xlane.xlu2 %899 }
 0x6c4   : > { %v901_v13 = vmul.f32 %v900_v12, %v2200_v22 }
 0x6c6   : > { %v902_v14 = vadd.f32 1e-05, %v901_v13 }
 0x6c8   : > { %1901 = vrsqrt.f32 %v902_v14  ;;  %vm909_vm9 = vweird.f32 %v902_v14 }
 0x6ce   : > { %v1902_v15 = vpop.eup %1901 }
 0x6cf   : > { %v904_v16 = vmul.f32 %v1902_v15, %v902_v14  ;;  %vm910_vm8 = vweird.f32 %v1902_v15 }
 0x6d0   : > { %vm911_vm10 = vmor %vm909_vm9, %vm910_vm8 }
 0x6d1   : > { %v905_v17 = vmul.f32 %v1902_v15, %v904_v16 }
 0x6d3   : > { %v906_v18 = vmul.f32 0.5, %v905_v17 }
 0x6d5   : > { %v907_v19 = vsub.f32 1.5, %v906_v18 }
 0x6d7   : > { %v908_v20 = vmul.f32 %v1902_v15, %v907_v19 }
 0x6d9   : > { %v912_v23 = vsel %vm911_vm10, %v1902_v15, %v908_v20 }
 0x6da   : > { %v913_v26 = vmul.f32 %v912_v23, %v896_v63 }
 0x6dc   : > { %v915_v27 = vmul.f32 %v914_v21, %v913_v26 }
 0x6de   : > { %v2261_v8 = vadd.f32 %v916_v25, %v915_v27 }
 0x6e0   : > { %v920_v28 = vpack.c.bf16 %v2261_v8, %v2261_v8 }
 0x6e2   : > { %1714 = vmatmul.msk.bf16.vlgmr.msra.gmra.mxu2 %vm349_vm0, %v920_v28  ;;  %1723 = vmatmul.msk.bf16.vlgmr.msra.gmra.mxu3 %vm349_vm0, %v920_v28 }
 0x6e3   : > { %1732 = vmatmul.msk.bf16.vlgmr.msrb.gmra.mxu0 %vm349_vm0, %v920_v28  ;;  %1741 = vmatmul.msk.bf16.vlgmr.msrb.gmra.mxu1 %vm349_vm0, %v920_v28 }
 0x760   : > { %v1029_v1 = vpop.f32.mrf.mxu0  ;;  %v1054_v30 = vpop.f32.mrf.mxu1 }
 0x761   : > { %v1030_v31 = vadd.f32 %v1876_v29, %v1029_v1  ;;  %v1055_v41 = vadd.f32 %v1877_v34, %v1054_v30 }
 0x763   : > { %v1060_v33 = vpack.c.bf16 %v1030_v31, %v1030_v31  ;;  %v1061_v48 = vpack.c.bf16 %v1055_v41, %v1055_v41 }
 0x765   : > { %v1111_v35 = vunpack.c.l.b16 %v1060_v33  ;;  %v979_v36 = vpop.f32.mrf.mxu2  ;;  %v1004_v37 = vpop.f32.mrf.mxu3  ;;  %v1135_v53 = vunpack.c.l.b16 %v1061_v48 }
 0x766   : > { %v980_v38 = vadd.f32 %v1878_v32, %v979_v36  ;;  %v1005_v39 = vadd.f32 %v1879_v24, %v1004_v37 }
 0x767   : > { %v2281_v40 = vpack.c.b16 %v1111_v35, %v1111_v35  ;;  %v2287_v54 = vpack.c.b16 %v1135_v53, %v1135_v53 }
 0x768   : > { %v1058_v42 = vpack.c.bf16 %v980_v38, %v980_v38  ;;  %v1059_v43 = vpack.c.bf16 %v1005_v39, %v1005_v39  ;;  %v1031_v44 = vpop.f32.mrf.mxu0  ;;  %v1056_v45 = vpop.f32.mrf.mxu1 }
 0x769   : > { %1113 = vrot.lane.b32.xlu1 %v2281_v40, %s1987_s20 }
 0x76a   : > { %v1063_v46 = vunpack.c.l.b16 %v1058_v42  ;;  %v1087_v47 = vunpack.c.l.b16 %v1059_v43 }
 0x76c   : > { %v1064_v49 = vpack.c.b16 %v1063_v46, %v1063_v46  ;;  %v1088_v50 = vpack.c.b16 %v1087_v47, %v1087_v47 }
 0x76d   : > { %v981_v51 = vpop.f32.mrf.mxu2  ;;  %v1006_v52 = vpop.f32.mrf.mxu3 }
 0x76e   : > { %1089 = vrot.lane.b32.xlu0 %v1088_v50, %s1987_s20  ;;  %1065 = vrot.lane.b32.xlu2 %v1064_v49, %s1987_s20 }
 0x776   : > { %1137 = vrot.lane.b32.xlu2 %v2287_v54, %s1987_s20  ;;  %s1798_s20 = sshll.u32 %s2056_s9, 3  ;;  %s1531_s9 = scalar_lea.sflag [#allocation3], %s294_s24 }
 0x777   : > { %s1541_s10 = scalar_lea.hbm %s2429_s8, %s1798_s20 }
 0x778   : > { %s1545_s17 = sshll.u32 %s1541_s10, 4  ;;  %s1546_s17 = int_to_ptr.hbm [resolvable:$true] %s1545_s17 }
 0x779   : > { %s1937_s18 = sshra.s32 %s1546_s17, 4  ;;  %s1938_s18 = int_to_ptr.hbm [resolvable:$true] %s1937_s18 }
 0x77a   : > { %s1939_s19 = scalar_lea.hbm %s1938_s18, 8  ;;  %p1944_p0 = scmp.lt.s32.totalorder %s1938_s18, %s2429_s8 }
 0x77b   : > { %p1940_p11 = scmp.ne.s32.totalorder %s1938_s18, %s1939_s19  ;;  %p1945_p1 = scmp.lt.s32.totalorder %s1943_s25, %s1939_s19 }
 0x77d   : > { %p1941_p12 = pnand %p1940_p11, %p2073_p5  ;;  %p1946_p2 = por %p1945_p1, %p1944_p0 }
 0x77f   : > { %p1942_p13 = pneg %p1941_p12 }
 0x781   : > { %p1947_p3 = pnand %p1946_p2, %p1942_p13 }
 0x7c8   : > { %v1066_v55 = vpop.permute.xlu2 %1065 }
 0x7c9   : > { %v1071_v56 = vsel %vm450_vm1, %v1066_v55, 0 }
 0x7ca   : > { %1080 = vmatpush.bf16.xpose.msrb.mxu2 %v1071_v56 }
 0x7d0   : > { %v1138_v57 = vpop.permute.xlu2 %1137 }
 0x7d1   : > { %v1143_v58 = vsel %vm450_vm1, %v1138_v57, 0  ;;  %1742 = vmatmul.msk.bf16.vlgmr.msrb.gmra.mxu2 %vm450_vm1, %v1058_v42  ;;  %v1750_v57 = vld [vmem:[%s2424_s3 + $0x10] sm:$0xf] }
 0x7d2   : > { %1152 = vmatpush.bf16.xpose.msra.mxu1 %v1143_v58  ;;  %v1303_v58 = vsel %vm595_vm2, %v1750_v57, 0 }
 0x7d9   : > { %1745 = vmatmul.msk.bf16.vlgmr.msra.gmra.mxu1 %vm450_vm1, %v1061_v48 }
 0x7db   : > { %v1114_v59 = vpop.permute.xlu1 %1113 }
 0x7dc   : > { %v1119_v60 = vsel %vm450_vm1, %v1114_v59, 0  ;;  %v1752_v59 = vld [vmem:[%s2424_s3 + $0x18] sm:$0xf] }
 0x7dd   : > { %1128 = vmatpush.bf16.xpose.msra.mxu0 %v1119_v60  ;;  %v1341_v60 = vsel %vm595_vm2, %v1752_v59, 0  ;;  %v1826_v59 = vld [vmem:[%s2427_s6 + $0x28] sm:$0xff] }
 0x7e0   : > { %v1090_v61 = vpop.permute.xlu0 %1089 }
 0x7e1   : > { %v1095_v62 = vsel %vm450_vm1, %v1090_v61, 0  ;;  %v1753_v61 = vld [vmem:[%s2424_s3 + $0x1c] sm:$0xf] }
 0x7e2   : > { %1104 = vmatpush.bf16.xpose.msrb.mxu3 %v1095_v62  ;;  %v1360_v62 = vsel %vm595_vm2, %v1753_v61, 0  ;;  %v1880_v61 = vld [vmem:[%s2426_s5 + $0x1] ss:$0 sm:$0xff] }
 0x7e4   : > { %1744 = vmatmul.msk.bf16.vlgmr.msra.gmra.mxu0 %vm450_vm1, %v1060_v33 }
 0x7e9   : > { %1743 = vmatmul.msk.bf16.vlgmr.msrb.gmra.mxu3 %vm450_vm1, %v1059_v43 }
 0x854   : > { %v1082_v63 = vpop.f32.mrf.mxu2 }
 0x855   : > { %v1158_v0 = vsel %vm450_vm1, %v1082_v63, -inf }
 0x856   : > { %1159 = vmax.xlane.f32.xlu2 %v1158_v0  ;;  %v1154_v2 = vpop.f32.mrf.mxu1 }
 0x857   : > { %v1167_v4 = vsel %vm450_vm1, %v1154_v2, -inf }
 0x85c   : > { %v1084_v3 = vpop.f32.mrf.mxu2 }
 0x85e   : > { %1168 = vmax.xlane.f32.xlu2 %v1167_v4  ;;  %v1156_v5 = vpop.f32.mrf.mxu1 }
 0x861   : > { %v1130_v6 = vpop.f32.mrf.mxu0 }
 0x862   : > { %v1164_v7 = vsel %vm450_vm1, %v1130_v6, -inf }
 0x863   : > { %1165 = vmax.xlane.f32.xlu1 %v1164_v7 }
 0x869   : > { %v1132_v9 = vpop.f32.mrf.mxu0 }
 0x86c   : > { %v1106_v10 = vpop.f32.mrf.mxu3 }
 0x86d   : > { %v1161_v11 = vsel %vm450_vm1, %v1106_v10, -inf }
 0x86e   : > { %1162 = vmax.xlane.f32.xlu0 %v1161_v11 }
 0x874   : > { %v1108_v12 = vpop.f32.mrf.mxu3 }
 0x87c   : > { %1227 = vrot.lane.b32.xlu1 %v1088_v50, %s1988_s21 }
 0x882   : > { %1206 = vrot.lane.b32.xlu0 %v1064_v49, %s1988_s21 }
 0x8c9   : > { %v1160_v13 = vpop.xlane.xlu2 %1159 }
 0x8ca   : > { %v1170_v14 = vsub.f32 %v1082_v63, %v1160_v13  ;;  %v1751_v63 = vld [vmem:[%s2424_s3 + $0x14] sm:$0xf] }
 0x8cb   : > { %v1322_v0 = vsel %vm595_vm2, %v1751_v63, 0 }
 0x8cc   : > { %v1174_v15 = vmul.f32 1.442695, %v1170_v14 }
 0x8ce   : > { %1903 = vpow2.f32 %v1174_v15 }
 0x8d1   : > { %v1169_v18 = vpop.xlane.xlu2 %1168 }
 0x8d2   : > { %v1173_v21 = vsub.f32 %v1154_v2, %v1169_v18 }
 0x8d4   : > { %v1904_v16 = vpop.eup %1903  ;;  %v1180_v25 = vmul.f32 1.442695, %v1173_v21 }
 0x8d5   : > { %v1182_v17 = vsel %vm450_vm1, %v1904_v16, 0.0 }
 0x8d6   : > { %v1166_v19 = vpop.xlane.xlu1 %1165  ;;  %1183 = vadd.xlane.f32.xlu0 %v1182_v17 }
 0x8d7   : > { %v1172_v20 = vsub.f32 %v1130_v6, %v1166_v19 }
 0x8d9   : > { %v1178_v23 = vmul.f32 1.442695, %v1172_v20 }
 0x8db   : > { %1905 = vpow2.f32 %v1178_v23 }
 0x8dc   : > { %1907 = vpow2.f32 %v1180_v25 }
 0x8e1   : > { %v1906_v26 = vpop.eup %1905  ;;  %v1163_v27 = vpop.xlane.xlu0 %1162 }
 0x8e2   : > { %v1171_v28 = vsub.f32 %v1106_v10, %v1163_v27  ;;  %v1188_v29 = vsel %vm450_vm1, %v1906_v26, 0.0  ;;  %v1908_v30 = vpop.eup %1907 }
 0x8e3   : > { %1189 = vadd.xlane.f32.xlu2 %v1188_v29  ;;  %v1191_v31 = vsel %vm450_vm1, %v1908_v30, 0.0 }
 0x8e4   : > { %v1176_v1 = vmul.f32 1.442695, %v1171_v28 }
 0x8e6   : > { %1909 = vpow2.f32 %v1176_v1 }
 0x8ea   : > { %1248 = vrot.lane.b32.xlu0 %v2281_v40, %s1988_s21 }
 0x8eb   : > { %1192 = vadd.xlane.f32.xlu2 %v1191_v31 }
 0x8ec   : > { %v1910_v24 = vpop.eup %1909 }
 0x8ed   : > { %v1185_v34 = vsel %vm450_vm1, %v1910_v24, 0.0 }
 0x8ee   : > { %v1228_v32 = vpop.permute.xlu1 %1227 }
 0x8ef   : > { %v1233_v33 = vsel %vm595_vm2, %v1228_v32, 0 }
 0x8f0   : > { %1242 = vmatpush.bf16.msra.mxu3 %v1233_v33 }
 0x8f3   : > { %1186 = vadd.xlane.f32.xlu2 %v1185_v34 }
 0x8f4   : > { %v1207_v35 = vpop.permute.xlu0 %1206  ;;  %1331 = vmatpush.bf16.msrb.mxu3 %v1322_v0 }
 0x8f5   : > { %v1212_v36 = vsel %vm595_vm2, %v1207_v35, 0 }
 0x8f6   : > { %1221 = vmatpush.bf16.msra.mxu2 %v1212_v36 }
 0x8fa   : > { %1312 = vmatpush.bf16.msrb.mxu2 %v1303_v58 }
 0x90b   : > { %1269 = vrot.lane.b32.xlu2 %v2287_v54, %s1988_s21 }
 0x949   : > { %v1184_v37 = vpop.xlane.xlu0 %1183 }
 0x94a   : > { %1911 = vrcp.f32 %v1184_v37 }
 0x950   : > { %v1912_v38 = vpop.eup %1911 }
 0x951   : > { %v1198_v39 = vmul.f32 %v1912_v38, %v1904_v16 }
 0x953   : > { %v1202_v40 = vpack.c.bf16 %v1198_v39, %v1198_v39 }
 0x955   : > { %1746 = vmatmul.msk.bf16.vlgmr.msra.gmra.mxu2 %vm450_vm1, %v1202_v40  ;;  %v1824_v40 = vld [vmem:[%s2425_s4 + $0x18] sm:$0xff] }
 0x956   : > { %v1190_v41 = vpop.xlane.xlu2 %1189  ;;  %1443 = vmatpush.bf16.msra.mxu2 %v1824_v40 }
 0x957   : > { %1913 = vrcp.f32 %v1190_v41  ;;  %v1828_v41 = vld [vmem:[%s2427_s6 + $0x38] sm:$0xff] }
 0x95c   : > { %v1249_v42 = vpop.permute.xlu0 %1248 }
 0x95d   : > { %v1914_v43 = vpop.eup %1913  ;;  %v1254_v44 = vsel %vm595_vm2, %v1249_v42, 0 }
 0x95e   : > { %v1200_v45 = vmul.f32 %v1914_v43, %v1906_v26  ;;  %v1193_v46 = vpop.xlane.xlu2 %1192  ;;  %1263 = vmatpush.bf16.msrb.mxu0 %v1254_v44  ;;  %v2346_v26 = vld [vmem:[%s2428_s7 + $0x8] sm:$0x3f]  ;;  %v1827_v44 = vld [vmem:[%s2427_s6 + $0x30] sm:$0xff] }
 0x95f   : > { %1915 = vrcp.f32 %v1193_v46  ;;  %v1382_v1 = vperm.slane %v2346_v26, 0 }
 0x960   : > { %v1204_v47 = vpack.c.bf16 %v1200_v45, %v1200_v45 }
 0x962   : > { %1748 = vmatmul.msk.bf16.vlgmr.msrb.gmra.mxu0 %vm450_vm1, %v1204_v47 }
 0x963   : > { %1350 = vmatpush.bf16.msra.mxu0 %v1341_v60  ;;  %v1825_v60 = vld [vmem:[%s2427_s6 + $0x20] sm:$0xff] }
 0x965   : > { %v1916_v49 = vpop.eup %1915 }
 0x966   : > { %v1187_v48 = vpop.xlane.xlu2 %1186  ;;  %v1201_v51 = vmul.f32 %v1916_v49, %v1908_v30 }
 0x967   : > { %1917 = vrcp.f32 %v1187_v48 }
 0x968   : > { %v1205_v56 = vpack.c.bf16 %v1201_v51, %v1201_v51 }
 0x96d   : > { %v1918_v50 = vpop.eup %1917 }
 0x96e   : > { %v1199_v52 = vmul.f32 %v1918_v50, %v1910_v24  ;;  %v1270_v53 = vpop.permute.xlu2 %1269 }
 0x96f   : > { %v1275_v54 = vsel %vm595_vm2, %v1270_v53, 0 }
 0x970   : > { %v1203_v55 = vpack.c.bf16 %v1199_v52, %v1199_v52  ;;  %1284 = vmatpush.bf16.msrb.mxu1 %v1275_v54  ;;  %v1407_v52 = vperm.slane %v2346_v26, 1  ;;  %v1409_v54 = vperm.slane %v2346_v26, 2 }
 0x972   : > { %1747 = vmatmul.msk.bf16.vlgmr.msra.gmra.mxu3 %vm450_vm1, %v1203_v55 }
 0x973   : > { %1749 = vmatmul.msk.bf16.vlgmr.msrb.gmra.mxu1 %vm450_vm1, %v1205_v56  ;;  %1493 = vmatpush.bf16.msra.mxu3 %v1828_v41 }
 0x974   : > { %1369 = vmatpush.bf16.msra.mxu1 %v1360_v62 }
 0x977   : > { %1494 = vmatpush.bf16.msra.mxu3 %v1827_v44 }
 0x97b   : > { %1495 = vmatpush.bf16.msra.mxu3 %v1826_v59 }
 0x97f   : > { %1496 = vmatpush.bf16.msra.mxu3 %v1825_v60 }
 0x9d8   : > { %v1223_v2 = vpop.f32.mrf.mxu2 }
 0x9d9   : > { %v1290_v3 = vpack.c.bf16 %v1223_v2, %v1223_v2 }
 0x9db   : > { %1754 = vmatmul.msk.bf16.vlgmr.msrb.gmra.mxu2 %vm450_vm1, %v1290_v3 }
 0x9df   : > { %v1265_v4 = vpop.f32.mrf.mxu0 }
 0x9e0   : > { %v1292_v5 = vpack.c.bf16 %v1265_v4, %v1265_v4  ;;  %v1225_v6 = vpop.f32.mrf.mxu2  ;;  %v1461_v4 = vperm.slane %v2346_v26, 3 }
 0x9e2   : > { %1756 = vmatmul.msk.bf16.vlgmr.msra.gmra.mxu0 %vm450_vm1, %v1292_v5 }
 0x9e7   : > { %v1267_v7 = vpop.f32.mrf.mxu0 }
 0x9f0   : > { %v1286_v9 = vpop.f32.mrf.mxu1 }
 0x9f1   : > { %v1293_v10 = vpack.c.bf16 %v1286_v9, %v1286_v9 }
 0x9f3   : > { %1757 = vmatmul.msk.bf16.vlgmr.msra.gmra.mxu1 %vm450_vm1, %v1293_v10 }
 0x9f5   : > { %v1244_v11 = vpop.f32.mrf.mxu3 }
 0x9f6   : > { %v1291_v12 = vpack.c.bf16 %v1244_v11, %v1244_v11 }
 0x9f8   : > { %v1288_v13 = vpop.f32.mrf.mxu1  ;;  %1755 = vmatmul.msk.bf16.vlgmr.msrb.gmra.mxu3 %vm450_vm1, %v1291_v12 }
 0x9fd   : > { %v1246_v14 = vpop.f32.mrf.mxu3 }
 0xa5e   : > { %v1314_v15 = vpop.f32.mrf.mxu2 }
 0xa5f   : > { %v1352_v16 = vpop.f32.mrf.mxu0  ;;  %v1375_v23 = vsel %vm349_vm0, %v1314_v15, 0.0 }
 0xa60   : > { %v1378_v28 = vsel %vm349_vm0, %v1352_v16, 0.0 }
 0xa66   : > { %v1316_v17 = vpop.f32.mrf.mxu2 }
 0xa67   : > { %v1354_v18 = vpop.f32.mrf.mxu0 }
 0xa70   : > { %v1371_v19 = vpop.f32.mrf.mxu1 }
 0xa71   : > { %v1380_v30 = vsel %vm349_vm0, %v1371_v19, 0.0 }
 0xa78   : > { %v1373_v20 = vpop.f32.mrf.mxu1 }
 0xa7b   : > { %v1333_v21 = vpop.f32.mrf.mxu3 }
 0xa7c   : > { %v1376_v25 = vsel %vm349_vm0, %v1333_v21, 0.0 }
 0xa7d   : > { %v1377_v27 = vadd.f32 %v1376_v25, %v1375_v23 }
 0xa7f   : > { %v1379_v29 = vadd.f32 %v1378_v28, %v1377_v27  ;;  %v1525_v28 = vperm.slane %v2346_v26, 4 }
 0xa81   : > { %v1381_v31 = vadd.f32 %v1380_v30, %v1379_v29 }
 0xa83   : > { %v1335_v32 = vpop.f32.mrf.mxu3  ;;  %v1383_v24 = vadd.f32 %v1382_v1, %v1381_v31  ;;  %v1527_v1 = vperm.slane %v2346_v26, 5 }
 0xa85   : > { %v1384_v33 = vadd.f32 %v1383_v24, %v2261_v8  ;;  %v1823_v8 = vld [vmem:[%s2425_s4 + $0x10] sm:$0xff] }
 0xa86   : > { %1444 = vmatpush.bf16.msra.mxu2 %v1823_v8 }
 0xa87   : > { %v1385_v34 = vsel %vm349_vm0, %v1384_v33, 0.0 }
 0xa88   : > { %1386 = vadd.xlane.f32.xlu1 %v1385_v34 }
 0xafb   : > { %v1387_v35 = vpop.xlane.xlu1 %1386 }
 0xafc   : > { %v1388_v36 = vmul.f32 %v1387_v35, %v2200_v22 }
 0xafe   : > { %v1389_v37 = vsub.f32 %v1384_v33, %v1388_v36 }
 0xb00   : > { %v1390_v38 = vmul.f32 %v1389_v37, %v1389_v37 }
 0xb02   : > { %v1391_v39 = vsel %vm349_vm0, %v1390_v38, 0.0 }
 0xb03   : > { %1392 = vadd.xlane.f32.xlu0 %v1391_v39 }
 0xb76   : > { %v1393_v42 = vpop.xlane.xlu0 %1392 }
 0xb77   : > { %v1394_v43 = vmul.f32 %v1393_v42, %v2200_v22 }
 0xb79   : > { %v1395_v45 = vadd.f32 1e-05, %v1394_v43 }
 0xb7b   : > { %1919 = vrsqrt.f32 %v1395_v45  ;;  %vm1402_vm12 = vweird.f32 %v1395_v45 }
 0xb81   : > { %v1920_v46 = vpop.eup %1919 }
 0xb82   : > { %v1397_v47 = vmul.f32 %v1920_v46, %v1395_v45  ;;  %vm1403_vm11 = vweird.f32 %v1920_v46 }
 0xb83   : > { %vm1404_vm13 = vmor %vm1402_vm12, %vm1403_vm11 }
 0xb84   : > { %v1398_v48 = vmul.f32 %v1920_v46, %v1397_v47 }
 0xb86   : > { %v1399_v49 = vmul.f32 0.5, %v1398_v48 }
 0xb88   : > { %v1400_v50 = vsub.f32 1.5, %v1399_v49 }
 0xb8a   : > { %v1401_v51 = vmul.f32 %v1920_v46, %v1400_v50 }
 0xb8c   : > { %v1405_v53 = vsel %vm1404_vm13, %v1920_v46, %v1401_v51 }
 0xb8d   : > { %v1406_v55 = vmul.f32 %v1405_v53, %v1389_v37 }
 0xb8f   : > { %v1408_v56 = vmul.f32 %v1407_v52, %v1406_v55 }
 0xb91   : > { %v1410_v57 = vadd.f32 %v1409_v54, %v1408_v56 }
 0xb93   : > { %v1411_v58 = vpack.c.bf16 %v1410_v57, %v1410_v57 }
 0xb95   : > { %1771 = vmatmul.msk.bf16.vlgmr.msra.gmra.mxu2 %vm349_vm0, %v1411_v58 }
 0xc18   : > { %v1446_v62 = vpop.f32.mrf.mxu2 }
 0xc19   : > { %v1447_v63 = vadd.f32 %v1880_v61, %v1446_v62 }
 0xc1b   : > { %v1450_v0 = vmax.f32 %v1447_v63, 0.0 }
 0xc1d   : > { %v1451_v2 = vpack.c.bf16 %v1450_v0, %v1450_v0 }
 0xc1f   : > { %1796 = vmatmul.msk.bf16.vlgmr.msra.gmra.mxu3 %vm874_vm7, %v1451_v2 }
 0xc20   : > { %v1448_v3 = vpop.f32.mrf.mxu2 }
 0xca2   : > { %v1498_v5 = vpop.f32.mrf.mxu3 }
 0xca3   : > { %v1499_v6 = vadd.f32 %v1498_v5, %v1461_v4 }
 0xca5   : > { %v1502_v7 = vadd.f32 %v1499_v6, %v1410_v57 }
 0xca7   : > { %v1503_v9 = vsel %vm349_vm0, %v1502_v7, 0.0 }
 0xca8   : > { %1504 = vadd.xlane.f32.xlu2 %v1503_v9 }
 0xcaa   : > { %v1500_v10 = vpop.f32.mrf.mxu3 }
 0xd1b   : > { %v1505_v11 = vpop.xlane.xlu2 %1504 }
 0xd1c   : > { %v1506_v12 = vmul.f32 %v1505_v11, %v2200_v22 }
 0xd1e   : > { %v1507_v13 = vsub.f32 %v1502_v7, %v1506_v12 }
 0xd20   : > { %v1508_v14 = vmul.f32 %v1507_v13, %v1507_v13 }
 0xd22   : > { %v1509_v15 = vsel %vm349_vm0, %v1508_v14, 0.0 }
 0xd23   : > { %1510 = vadd.xlane.f32.xlu1 %v1509_v15 }
 0xd96   : > { %v1511_v16 = vpop.xlane.xlu1 %1510 }
 0xd97   : > { %v1512_v17 = vmul.f32 %v1511_v16, %v2200_v22 }
 0xd99   : > { %v1513_v18 = vadd.f32 1e-05, %v1512_v17 }
 0xd9b   : > { %1921 = vrsqrt.f32 %v1513_v18  ;;  %vm1520_vm15 = vweird.f32 %v1513_v18 }
 0xda1   : > { %v1922_v19 = vpop.eup %1921 }
 0xda2   : > { %v1515_v20 = vmul.f32 %v1922_v19, %v1513_v18  ;;  %vm1521_vm14 = vweird.f32 %v1922_v19 }
 0xda3   : > { %vm1522_vm1 = vmor %vm1520_vm15, %vm1521_vm14 }
 0xda4   : > { %v1516_v21 = vmul.f32 %v1922_v19, %v1515_v20 }
 0xda6   : > { %v1517_v23 = vmul.f32 0.5, %v1516_v21 }
 0xda8   : > { %v1518_v25 = vsub.f32 1.5, %v1517_v23 }
 0xdaa   : > { %v1519_v27 = vmul.f32 %v1922_v19, %v1518_v25 }
 0xdac   : > { %v1523_v22 = vsel %vm1522_vm1, %v1922_v19, %v1519_v27 }
 0xdad   : > { %v1524_v29 = vmul.f32 %v1523_v22, %v1507_v13 }
 0xdaf   : > { %v1526_v30 = vmul.f32 %v1525_v28, %v1524_v29 }
 0xdb1   : > { %v1528_v31 = vadd.f32 %v1527_v1, %v1526_v30 }
 0xdb3   : > { %1529 = vst.msk [vmem:[%s296_s12] sm:$0xff] %vm349_vm0, %v1528_v31 }
 0xdb4   : > { %1950 = shalt.err (!%p1947_p3)
}
 0xdb5   : > { %1829 = dma.vmem_to_hbm [thread:$0]  (%p2073_p5), %s1544_s13, 128, %s1546_s17, %s1531_s9  }
 0xdb6 PF: > { %p1835_p4 = scmp.ge.s32.totalorder %s1985_s30, 2  ;;  %s1557_s24 = sand.u32 1, %s1973_s27  }
 0xdb7   : > { %s1558_s26 = scalar_lea.sflag [#allocation3], %s1557_s24 }
 0xdb8   : > { %p1832_p7 = pnand %p1835_p4, %p2077_p6 }
 0xdba   : > { %p1833_p8 = pneg %p1832_p7 }
 0xdbc   : > { %1968 = dma.done.wait (%p1833_p8), %s1558_s26, 128  }
 0xdbd   : > { %1970 = vsyncadd (%p1833_p8), %s1558_s26, 4294967168  ;;  %p18_p9 = scmp.ge.s32.totalorder %s2060_s11, 4   ;;  %s2432_s27 = smov %s1977_s28 }
 0xdbe   : > { %s2433_s28 = smov %s1981_s29  ;;  %s2434_s29 = smov %s2071_s14 }
 0xdbf   : > { %s2435_s30 = smov %s2060_s11  ;;  %20 = sbr.rel (!%p18_p9) target bundleno = 3 (0x3), region = 94 }
 0xdc4   :  { %1564 = vsyncpa [#allocation3], 1 }
 0xdc5   :  { %1566 = vsyncpa [#allocation3 + $0x1], 1 }

</bundles_post_ra>
